<compile_context>
chip_gen: v7x
topology: tpu7x:2x2x1
jax: 0.10.0
libtpu: 0.0.40
codegen_flags: <defaults>
</compile_context>

<pallas_src>
import math

import jax
import jax.numpy as jnp
from jax.experimental import pallas as pl
from jax.experimental.pallas import tpu as pltpu

# ----------------------------- model config -----------------------------
HIDDEN = 32        # args.hidden_size
HEADS = 2
DH = HIDDEN // HEADS
LAYERS = 2
FF = 64
VOCAB = 50
MAX_POS = 64
SEGS = 3
APP_HIDDEN = 16    # args.app_hidden_units
SLOT_DIM = 6
INTENT_DIM = 5
LOGIT_PAD = 128    # lane-dense padded logits width (sliced back in the wrapper)
B = 2
S = 8
LN_EPS = 1e-6      # UER / K-BERT layernorm eps
ATTN_SCALE = 1.0 / math.sqrt(DH)


# ----------------------------- in-kernel helpers -----------------------------

def _layernorm(x, g, b):
    mean = jnp.mean(x, axis=-1, keepdims=True)
    var = jnp.mean((x - mean) ** 2, axis=-1, keepdims=True)
    return (x - mean) * jax.lax.rsqrt(var + LN_EPS) * g + b


def _gelu(x):
    # TODO(synk): UER/K-BERT uses erf-based GELU; tanh approximation used here
    # (tanh goes to the EUP slot, so it is effectively free on TPU).
    c = math.sqrt(2.0 / math.pi)
    return 0.5 * x * (1.0 + jnp.tanh(c * (x + 0.044715 * x * x * x)))


# ----------------------------- fused forward kernel -----------------------------

def _fused_forward_kernel(
    emb_ref, bias_ref,
    emb_ln_g_ref, emb_ln_b_ref,
    wqkv_ref, bqkv_ref, wo_ref, bo_ref,
    ln1_g_ref, ln1_b_ref,
    wff1_ref, bff1_ref, wff2_ref, bff2_ref,
    ln2_g_ref, ln2_b_ref,
    pooler_w_ref, pooler_b_ref,
    slot_hid_w_ref, slot_hid_b_ref, slot_cls_w_ref, slot_cls_b_ref,
    int_hid_w_ref, int_hid_b_ref, int_cls_w_ref, int_cls_b_ref,
    slot_out_ref, intent_out_ref,
):
    """One grid step == one batch example; everything stays in VMEM/vregs."""
    # --- embedding layernorm (no residual; embedding gathers done in XLA glue) ---
    x = _layernorm(emb_ref[0], emb_ln_g_ref[...], emb_ln_b_ref[...])   # (S, H)
    bias = bias_ref[0]                                                 # (S, S)

    # --- encoder layers (statically unrolled python loop) ---
    for l in range(LAYERS):
        # packed QKV projection: one (S,H)@(H,3H) MXU matmul per layer
        qkv = jnp.dot(x, wqkv_ref[l], preferred_element_type=jnp.float32) + bqkv_ref[l]
        ctx_heads = []
        for h in range(HEADS):
            qh = qkv[:, h * DH:(h + 1) * DH]
            kh = qkv[:, HIDDEN + h * DH:HIDDEN + (h + 1) * DH]
            vh = qkv[:, 2 * HIDDEN + h * DH:2 * HIDDEN + (h + 1) * DH]
            # q @ k^T contracted on the feature dim (no explicit transpose needed)
            s = jax.lax.dot_general(qh, kh, (((1,), (1,)), ((), ())),
                                    preferred_element_type=jnp.float32)
            s = s * ATTN_SCALE + bias
            s = s - jnp.max(s, axis=-1, keepdims=True)
            p = jnp.exp(s)
            p = p * pl.reciprocal(jnp.sum(p, axis=-1, keepdims=True), approx=True)
            ctx_heads.append(jnp.dot(p, vh, preferred_element_type=jnp.float32))
        ctx = jnp.concatenate(ctx_heads, axis=-1)                       # (S, H)

        attn_out = jnp.dot(ctx, wo_ref[l], preferred_element_type=jnp.float32) + bo_ref[l]
        inter = _layernorm(attn_out + x, ln1_g_ref[l], ln1_b_ref[l])

        ff = _gelu(jnp.dot(inter, wff1_ref[l], preferred_element_type=jnp.float32) + bff1_ref[l])
        ff = jnp.dot(ff, wff2_ref[l], preferred_element_type=jnp.float32) + bff2_ref[l]
        x = _layernorm(ff + inter, ln2_g_ref[l], ln2_b_ref[l])

    # --- slot head: relu(hidden) -> classifier (lane-padded to 128 for dense stores) ---
    seq_h = jnp.maximum(
        jnp.dot(x, slot_hid_w_ref[...], preferred_element_type=jnp.float32)
        + slot_hid_b_ref[...], 0.0)
    slot_logits = (jnp.dot(seq_h, slot_cls_w_ref[...], preferred_element_type=jnp.float32)
                   + slot_cls_b_ref[...])
    slot_out_ref[0] = slot_logits.astype(slot_out_ref.dtype)            # (S, 128)

    # --- pooler (dense+tanh on first token) + intent head ---
    first = x[0:1, :]                                                   # (1, H)
    pooled = jnp.tanh(
        jnp.dot(first, pooler_w_ref[...], preferred_element_type=jnp.float32)
        + pooler_b_ref[...])
    int_h = jnp.maximum(
        jnp.dot(pooled, int_hid_w_ref[...], preferred_element_type=jnp.float32)
        + int_hid_b_ref[...], 0.0)
    intent_logits = (jnp.dot(int_h, int_cls_w_ref[...], preferred_element_type=jnp.float32)
                     + int_cls_b_ref[...])
    intent_out_ref[0] = intent_logits.astype(intent_out_ref.dtype)      # (1, 128)


# ----------------------------- parameters -----------------------------

def init_params(key):
    keys = iter(jax.random.split(key, 64))

    def xavier(shape):
        limit = math.sqrt(6.0 / (shape[-2] + shape[-1]))
        return jax.random.uniform(next(keys), shape, jnp.float32, -limit, limit)

    def normal(shape, std=0.02):
        return std * jax.random.normal(next(keys), shape, jnp.float32)

    def xavier_stack(n, shape):
        return jnp.stack([xavier(shape) for _ in range(n)])

    p = {
        "word_emb": normal((VOCAB, HIDDEN)),
        "pos_emb": normal((MAX_POS, HIDDEN)),
        "seg_emb": normal((SEGS, HIDDEN)),
        "emb_ln_g": jnp.ones((HIDDEN,), jnp.float32),
        "emb_ln_b": jnp.zeros((HIDDEN,), jnp.float32),
        # packed Wq | Wk | Wv, stacked over layers
        "wqkv": jnp.concatenate(
            [xavier_stack(LAYERS, (HIDDEN, HIDDEN)) for _ in range(3)], axis=-1),
        "bqkv": jnp.zeros((LAYERS, 3 * HIDDEN), jnp.float32),
        "wo": xavier_stack(LAYERS, (HIDDEN, HIDDEN)),
        "bo": jnp.zeros((LAYERS, HIDDEN), jnp.float32),
        "ln1_g": jnp.ones((LAYERS, HIDDEN), jnp.float32),
        "ln1_b": jnp.zeros((LAYERS, HIDDEN), jnp.float32),
        "wff1": xavier_stack(LAYERS, (HIDDEN, FF)),
        "bff1": jnp.zeros((LAYERS, FF), jnp.float32),
        "wff2": xavier_stack(LAYERS, (FF, HIDDEN)),
        "bff2": jnp.zeros((LAYERS, HIDDEN), jnp.float32),
        "ln2_g": jnp.ones((LAYERS, HIDDEN), jnp.float32),
        "ln2_b": jnp.zeros((LAYERS, HIDDEN), jnp.float32),
        "pooler_w": xavier((HIDDEN, HIDDEN)),
        "pooler_b": jnp.zeros((HIDDEN,), jnp.float32),
        "slot_hidden_w": xavier((HIDDEN, APP_HIDDEN)),
        "slot_hidden_b": jnp.zeros((APP_HIDDEN,), jnp.float32),
        "intent_hidden_w": xavier((HIDDEN, APP_HIDDEN)),
        "intent_hidden_b": jnp.zeros((APP_HIDDEN,), jnp.float32),
        "slot_cls_w": xavier((APP_HIDDEN, SLOT_DIM)),
        "slot_cls_b": jnp.zeros((SLOT_DIM,), jnp.float32),
        "intent_cls_w": xavier((APP_HIDDEN, INTENT_DIM)),
        "intent_cls_b": jnp.zeros((INTENT_DIM,), jnp.float32),
    }
    return p


# ----------------------------- forward pass (wrapper) -----------------------------

def joint_bert_forward(params, word_seq, word_mask, word_pos=None, word_vm=None):
    """JointBERT.forward with context=False, finetune=False, app_hidden_units>0."""
    Bb, Ss = word_seq.shape

    # --- K-BERT embedding gathers: word + position + segment(=mask) (XLA glue) ---
    word = params["word_emb"][word_seq]
    pos_ids = word_pos if word_pos is not None else jnp.broadcast_to(
        jnp.arange(Ss, dtype=jnp.int32), (Bb, Ss))
    emb = (word + params["pos_emb"][pos_ids] + params["seg_emb"][word_mask]
           ).astype(jnp.float32)                                         # (B, S, H)

    # --- attention bias: visible matrix if provided (use_vm=True), else padding mask ---
    if word_vm is not None:
        bias = (1.0 - word_vm.astype(jnp.float32)) * -10000.0
    else:
        m = (word_mask > 0).astype(jnp.float32)[:, None, :]
        bias = (1.0 - jnp.broadcast_to(m, (Bb, Ss, Ss))) * -10000.0       # (B, S, S)

    # --- lane-pad classifier weights so HBM stores are 128-wide (unmasked vst) ---
    slot_cls_w = jnp.zeros((APP_HIDDEN, LOGIT_PAD), jnp.float32).at[:, :SLOT_DIM].set(
        params["slot_cls_w"])
    slot_cls_b = jnp.zeros((1, LOGIT_PAD), jnp.float32).at[0, :SLOT_DIM].set(
        params["slot_cls_b"])
    int_cls_w = jnp.zeros((APP_HIDDEN, LOGIT_PAD), jnp.float32).at[:, :INTENT_DIM].set(
        params["intent_cls_w"])
    int_cls_b = jnp.zeros((1, LOGIT_PAD), jnp.float32).at[0, :INTENT_DIM].set(
        params["intent_cls_b"])

    row2 = lambda a: a.reshape(1, -1)
    lay2 = lambda a: a.reshape(LAYERS, 1, -1)

    def full(shape):
        # constant index_map -> weight tiles stay resident in VMEM across grid steps
        return pl.BlockSpec(shape, lambda b, _n=len(shape): (0,) * _n)

    def per_batch(shape):
        return pl.BlockSpec(shape, lambda b: (b, 0, 0))

    in_specs = [
        per_batch((1, Ss, HIDDEN)),                                      # emb
        per_batch((1, Ss, Ss)),                                          # bias
        full((1, HIDDEN)), full((1, HIDDEN)),                            # emb ln g/b
        full((LAYERS, HIDDEN, 3 * HIDDEN)), full((LAYERS, 1, 3 * HIDDEN)),  # wqkv/bqkv
        full((LAYERS, HIDDEN, HIDDEN)), full((LAYERS, 1, HIDDEN)),       # wo/bo
        full((LAYERS, 1, HIDDEN)), full((LAYERS, 1, HIDDEN)),            # ln1 g/b
        full((LAYERS, HIDDEN, FF)), full((LAYERS, 1, FF)),               # ff1 w/b
        full((LAYERS, FF, HIDDEN)), full((LAYERS, 1, HIDDEN)),           # ff2 w/b
        full((LAYERS, 1, HIDDEN)), full((LAYERS, 1, HIDDEN)),            # ln2 g/b
        full((HIDDEN, HIDDEN)), full((1, HIDDEN)),                       # pooler w/b
        full((HIDDEN, APP_HIDDEN)), full((1, APP_HIDDEN)),               # slot hidden w/b
        full((APP_HIDDEN, LOGIT_PAD)), full((1, LOGIT_PAD)),             # slot cls w/b (padded)
        full((HIDDEN, APP_HIDDEN)), full((1, APP_HIDDEN)),               # intent hidden w/b
        full((APP_HIDDEN, LOGIT_PAD)), full((1, LOGIT_PAD)),             # intent cls w/b (padded)
    ]

    out_specs = (
        pl.BlockSpec((1, Ss, LOGIT_PAD), lambda b: (b, 0, 0)),
        pl.BlockSpec((1, 1, LOGIT_PAD), lambda b: (b, 0, 0)),
    )
    out_shape = (
        jax.ShapeDtypeStruct((Bb, Ss, LOGIT_PAD), jnp.float32),
        jax.ShapeDtypeStruct((Bb, 1, LOGIT_PAD), jnp.float32),
    )

    slot_pad, intent_pad = pl.pallas_call(
        _fused_forward_kernel,
        out_shape=out_shape,
        grid=(Bb,),
        in_specs=in_specs,
        out_specs=out_specs,
        compiler_params=pltpu.CompilerParams(
            dimension_semantics=("parallel",)),
    )(
        emb, bias,
        row2(params["emb_ln_g"]), row2(params["emb_ln_b"]),
        params["wqkv"], lay2(params["bqkv"]),
        params["wo"], lay2(params["bo"]),
        lay2(params["ln1_g"]), lay2(params["ln1_b"]),
        params["wff1"], lay2(params["bff1"]),
        params["wff2"], lay2(params["bff2"]),
        lay2(params["ln2_g"]), lay2(params["ln2_b"]),
        params["pooler_w"], row2(params["pooler_b"]),
        params["slot_hidden_w"], row2(params["slot_hidden_b"]),
        slot_cls_w, slot_cls_b,
        params["intent_hidden_w"], row2(params["intent_hidden_b"]),
        int_cls_w, int_cls_b,
    )

    slot_logits = slot_pad[:, :, :SLOT_DIM]
    intent_logits = intent_pad[:, 0, :INTENT_DIM]
    # TODO(synk): optional CrossEntropy / BCEWithLogits loss branches (active only when
    # label tensors are passed) and the context=True path are not implemented here.
    return slot_logits, intent_logits


# ----------------------------- main -----------------------------

if __name__ == "__main__":
    key = jax.random.PRNGKey(0)
    pkey, dkey = jax.random.split(key)
    params = init_params(pkey)

    word_seq = jax.random.randint(dkey, (B, S), 0, VOCAB, dtype=jnp.int32)
    word_mask = jnp.ones((B, S), jnp.int32).at[1, -2:].set(0)   # pad last 2 tokens of example 1
    word_pos = jnp.broadcast_to(jnp.arange(S, dtype=jnp.int32), (B, S))
    # synthetic visible matrix: token i sees token j iff both are non-pad
    word_vm = (word_mask[:, :, None] * word_mask[:, None, :]).astype(jnp.float32)

    fwd = jax.jit(joint_bert_forward)
    slot_logits, intent_logits = fwd(params, word_seq, word_mask, word_pos, word_vm)
    jax.block_until_ready((slot_logits, intent_logits))

    assert slot_logits.shape == (B, S, SLOT_DIM)
    assert intent_logits.shape == (B, INTENT_DIM)
    assert bool(jnp.all(jnp.isfinite(slot_logits))) and bool(jnp.all(jnp.isfinite(intent_logits)))
    print("KERNEL_OK")
</pallas_src>

<mosaic_0001>
module attributes {stable_mosaic.version = 11 : i64} {
  func.func @_fused_forward_kernel(%arg0: i32, %arg1: memref<1x8x32xf32, #tpu.memory_space<vmem>>, %arg2: memref<1x8x8xf32, #tpu.memory_space<vmem>>, %arg3: memref<1x32xf32, #tpu.memory_space<vmem>>, %arg4: memref<1x32xf32, #tpu.memory_space<vmem>>, %arg5: memref<2x32x96xf32, #tpu.memory_space<vmem>>, %arg6: memref<2x1x96xf32, #tpu.memory_space<vmem>>, %arg7: memref<2x32x32xf32, #tpu.memory_space<vmem>>, %arg8: memref<2x1x32xf32, #tpu.memory_space<vmem>>, %arg9: memref<2x1x32xf32, #tpu.memory_space<vmem>>, %arg10: memref<2x1x32xf32, #tpu.memory_space<vmem>>, %arg11: memref<2x32x64xf32, #tpu.memory_space<vmem>>, %arg12: memref<2x1x64xf32, #tpu.memory_space<vmem>>, %arg13: memref<2x64x32xf32, #tpu.memory_space<vmem>>, %arg14: memref<2x1x32xf32, #tpu.memory_space<vmem>>, %arg15: memref<2x1x32xf32, #tpu.memory_space<vmem>>, %arg16: memref<2x1x32xf32, #tpu.memory_space<vmem>>, %arg17: memref<32x32xf32, #tpu.memory_space<vmem>>, %arg18: memref<1x32xf32, #tpu.memory_space<vmem>>, %arg19: memref<32x16xf32, #tpu.memory_space<vmem>>, %arg20: memref<1x16xf32, #tpu.memory_space<vmem>>, %arg21: memref<16x128xf32, #tpu.memory_space<vmem>>, %arg22: memref<1x128xf32, #tpu.memory_space<vmem>>, %arg23: memref<32x16xf32, #tpu.memory_space<vmem>>, %arg24: memref<1x16xf32, #tpu.memory_space<vmem>>, %arg25: memref<16x128xf32, #tpu.memory_space<vmem>>, %arg26: memref<1x128xf32, #tpu.memory_space<vmem>>, %arg27: memref<1x8x128xf32, #tpu.memory_space<vmem>>, %arg28: memref<1x1x128xf32, #tpu.memory_space<vmem>>) attributes {dimension_semantics = [#tpu.dimension_semantics<parallel>], iteration_bounds = array<i64: 2>, scalar_prefetch = 0 : i64, scratch_operands = 0 : i64, tpu.core_type = #tpu.core_type<tc>, window_params = [{transform_indices = @transform_0, window_bounds = array<i64: 1, 8, 32>}, {transform_indices = @transform_1, window_bounds = array<i64: 1, 8, 8>}, {pipeline_mode = #tpu.pipeline_mode<synchronous>, transform_indices = @transform_2, window_bounds = array<i64: 1, 32>}, {pipeline_mode = #tpu.pipeline_mode<synchronous>, transform_indices = @transform_3, window_bounds = array<i64: 1, 32>}, {pipeline_mode = #tpu.pipeline_mode<synchronous>, transform_indices = @transform_4, window_bounds = array<i64: 2, 32, 96>}, {pipeline_mode = #tpu.pipeline_mode<synchronous>, transform_indices = @transform_5, window_bounds = array<i64: 2, 1, 96>}, {pipeline_mode = #tpu.pipeline_mode<synchronous>, transform_indices = @transform_6, window_bounds = array<i64: 2, 32, 32>}, {pipeline_mode = #tpu.pipeline_mode<synchronous>, transform_indices = @transform_7, window_bounds = array<i64: 2, 1, 32>}, {pipeline_mode = #tpu.pipeline_mode<synchronous>, transform_indices = @transform_8, window_bounds = array<i64: 2, 1, 32>}, {pipeline_mode = #tpu.pipeline_mode<synchronous>, transform_indices = @transform_9, window_bounds = array<i64: 2, 1, 32>}, {pipeline_mode = #tpu.pipeline_mode<synchronous>, transform_indices = @transform_10, window_bounds = array<i64: 2, 32, 64>}, {pipeline_mode = #tpu.pipeline_mode<synchronous>, transform_indices = @transform_11, window_bounds = array<i64: 2, 1, 64>}, {pipeline_mode = #tpu.pipeline_mode<synchronous>, transform_indices = @transform_12, window_bounds = array<i64: 2, 64, 32>}, {pipeline_mode = #tpu.pipeline_mode<synchronous>, transform_indices = @transform_13, window_bounds = array<i64: 2, 1, 32>}, {pipeline_mode = #tpu.pipeline_mode<synchronous>, transform_indices = @transform_14, window_bounds = array<i64: 2, 1, 32>}, {pipeline_mode = #tpu.pipeline_mode<synchronous>, transform_indices = @transform_15, window_bounds = array<i64: 2, 1, 32>}, {pipeline_mode = #tpu.pipeline_mode<synchronous>, transform_indices = @transform_16, window_bounds = array<i64: 32, 32>}, {pipeline_mode = #tpu.pipeline_mode<synchronous>, transform_indices = @transform_17, window_bounds = array<i64: 1, 32>}, {pipeline_mode = #tpu.pipeline_mode<synchronous>, transform_indices = @transform_18, window_bounds = array<i64: 32, 16>}, {pipeline_mode = #tpu.pipeline_mode<synchronous>, transform_indices = @transform_19, window_bounds = array<i64: 1, 16>}, {pipeline_mode = #tpu.pipeline_mode<synchronous>, transform_indices = @transform_20, window_bounds = array<i64: 16, 128>}, {pipeline_mode = #tpu.pipeline_mode<synchronous>, transform_indices = @transform_21, window_bounds = array<i64: 1, 128>}, {pipeline_mode = #tpu.pipeline_mode<synchronous>, transform_indices = @transform_22, window_bounds = array<i64: 32, 16>}, {pipeline_mode = #tpu.pipeline_mode<synchronous>, transform_indices = @transform_23, window_bounds = array<i64: 1, 16>}, {pipeline_mode = #tpu.pipeline_mode<synchronous>, transform_indices = @transform_24, window_bounds = array<i64: 16, 128>}, {pipeline_mode = #tpu.pipeline_mode<synchronous>, transform_indices = @transform_25, window_bounds = array<i64: 1, 128>}, {transform_indices = @transform_26, window_bounds = array<i64: 1, 8, 128>}, {transform_indices = @transform_27, window_bounds = array<i64: 1, 1, 128>}]} {
    %c0 = arith.constant 0 : index
    %c0_0 = arith.constant 0 : index
    %c0_1 = arith.constant 0 : index
    %0 = vector.load %arg1[%c0, %c0_0, %c0_1] : memref<1x8x32xf32, #tpu.memory_space<vmem>>, vector<1x8x32xf32>
    %1 = vector.shape_cast %0 : vector<1x8x32xf32> to vector<8x32xf32>
    %c0_2 = arith.constant 0 : index
    %c0_3 = arith.constant 0 : index
    %2 = vector.load %arg3[%c0_2, %c0_3] : memref<1x32xf32, #tpu.memory_space<vmem>>, vector<1x32xf32>
    %c0_4 = arith.constant 0 : index
    %c0_5 = arith.constant 0 : index
    %3 = vector.load %arg4[%c0_4, %c0_5] : memref<1x32xf32, #tpu.memory_space<vmem>>, vector<1x32xf32>
    %cst = arith.constant dense<0.000000e+00> : vector<8xf32>
    %4 = vector.multi_reduction <add>, %1, %cst [1] : vector<8x32xf32> to vector<8xf32>
    %5 = vector.shape_cast %4 : vector<8xf32> to vector<8x1xf32>
    %cst_6 = arith.constant 3.200000e+01 : f32
    %6 = vector.broadcast %cst_6 : f32 to vector<8x1xf32>
    %7 = arith.divf %5, %6 : vector<8x1xf32>
    %8 = vector.broadcast %7 : vector<8x1xf32> to vector<8x32xf32>
    %9 = arith.subf %1, %8 : vector<8x32xf32>
    %10 = arith.mulf %9, %9 : vector<8x32xf32>
    %cst_7 = arith.constant dense<0.000000e+00> : vector<8xf32>
    %11 = vector.multi_reduction <add>, %10, %cst_7 [1] : vector<8x32xf32> to vector<8xf32>
    %12 = vector.shape_cast %11 : vector<8xf32> to vector<8x1xf32>
    %cst_8 = arith.constant 3.200000e+01 : f32
    %13 = vector.broadcast %cst_8 : f32 to vector<8x1xf32>
    %14 = arith.divf %12, %13 : vector<8x1xf32>
    %15 = vector.broadcast %7 : vector<8x1xf32> to vector<8x32xf32>
    %16 = arith.subf %1, %15 : vector<8x32xf32>
    %cst_9 = arith.constant 9.99999997E-7 : f32
    %17 = vector.broadcast %cst_9 : f32 to vector<8x1xf32>
    %18 = arith.addf %14, %17 : vector<8x1xf32>
    %19 = math.rsqrt %18 : vector<8x1xf32>
    %20 = vector.broadcast %19 : vector<8x1xf32> to vector<8x32xf32>
    %21 = arith.mulf %16, %20 : vector<8x32xf32>
    %22 = vector.broadcast %2 : vector<1x32xf32> to vector<8x32xf32>
    %23 = arith.mulf %21, %22 : vector<8x32xf32>
    %24 = vector.broadcast %3 : vector<1x32xf32> to vector<8x32xf32>
    %25 = arith.addf %23, %24 : vector<8x32xf32>
    %c0_10 = arith.constant 0 : index
    %c0_11 = arith.constant 0 : index
    %c0_12 = arith.constant 0 : index
    %26 = vector.load %arg2[%c0_10, %c0_11, %c0_12] : memref<1x8x8xf32, #tpu.memory_space<vmem>>, vector<1x8x8xf32>
    %27 = vector.shape_cast %26 : vector<1x8x8xf32> to vector<8x8xf32>
    %c0_13 = arith.constant 0 : index
    %c0_14 = arith.constant 0 : index
    %c0_15 = arith.constant 0 : index
    %28 = vector.load %arg5[%c0_13, %c0_14, %c0_15] : memref<2x32x96xf32, #tpu.memory_space<vmem>>, vector<1x32x96xf32>
    %29 = vector.shape_cast %28 : vector<1x32x96xf32> to vector<32x96xf32>
    %cst_16 = arith.constant dense<0.000000e+00> : vector<8x96xf32>
    %30 = tpu.matmul %25, %29, %cst_16 {dimension_numbers = #tpu.dot_dimension_numbers<[1], [0], [0], [1], [0, 0, 1, 1], [], []>} : vector<8x32xf32>, vector<32x96xf32>, vector<8x96xf32> -> vector<8x96xf32>
    %c0_17 = arith.constant 0 : index
    %c0_18 = arith.constant 0 : index
    %c0_19 = arith.constant 0 : index
    %31 = vector.load %arg6[%c0_17, %c0_18, %c0_19] : memref<2x1x96xf32, #tpu.memory_space<vmem>>, vector<1x1x96xf32>
    %32 = vector.shape_cast %31 : vector<1x1x96xf32> to vector<1x96xf32>
    %33 = vector.broadcast %32 : vector<1x96xf32> to vector<8x96xf32>
    %34 = arith.addf %30, %33 : vector<8x96xf32>
    %35 = vector.extract_strided_slice %34 {offsets = [0, 0], sizes = [8, 16], strides = [1, 1]} : vector<8x96xf32> to vector<8x16xf32>
    %36 = vector.extract_strided_slice %34 {offsets = [0, 32], sizes = [8, 16], strides = [1, 1]} : vector<8x96xf32> to vector<8x16xf32>
    %37 = vector.extract_strided_slice %34 {offsets = [0, 64], sizes = [8, 16], strides = [1, 1]} : vector<8x96xf32> to vector<8x16xf32>
    %cst_20 = arith.constant dense<0.000000e+00> : vector<8x8xf32>
    %38 = tpu.matmul %35, %36, %cst_20 {dimension_numbers = #tpu.dot_dimension_numbers<[1], [1], [0], [0], [0, 0, 1, 0], [], []>} : vector<8x16xf32>, vector<8x16xf32>, vector<8x8xf32> -> vector<8x8xf32>
    %cst_21 = arith.constant 2.500000e-01 : f32
    %39 = vector.broadcast %cst_21 : f32 to vector<8x8xf32>
    %40 = arith.mulf %38, %39 : vector<8x8xf32>
    %41 = arith.addf %40, %27 : vector<8x8xf32>
    %cst_22 = arith.constant dense<0xFF800000> : vector<8xf32>
    %42 = vector.multi_reduction <maximumf>, %41, %cst_22 [1] : vector<8x8xf32> to vector<8xf32>
    %43 = vector.shape_cast %42 : vector<8xf32> to vector<8x1xf32>
    %44 = vector.broadcast %43 : vector<8x1xf32> to vector<8x8xf32>
    %45 = arith.subf %41, %44 : vector<8x8xf32>
    %46 = math.exp %45 : vector<8x8xf32>
    %cst_23 = arith.constant dense<0.000000e+00> : vector<8xf32>
    %47 = vector.multi_reduction <add>, %46, %cst_23 [1] : vector<8x8xf32> to vector<8xf32>
    %48 = vector.shape_cast %47 : vector<8xf32> to vector<8x1xf32>
    %49 = tpu.reciprocal %48 {approx = true} : vector<8x1xf32> -> vector<8x1xf32>
    %50 = vector.broadcast %49 : vector<8x1xf32> to vector<8x8xf32>
    %51 = arith.mulf %46, %50 : vector<8x8xf32>
    %cst_24 = arith.constant dense<0.000000e+00> : vector<8x16xf32>
    %52 = tpu.matmul %51, %37, %cst_24 {dimension_numbers = #tpu.dot_dimension_numbers<[1], [0], [0], [1], [0, 0, 1, 1], [], []>} : vector<8x8xf32>, vector<8x16xf32>, vector<8x16xf32> -> vector<8x16xf32>
    %53 = vector.extract_strided_slice %34 {offsets = [0, 16], sizes = [8, 16], strides = [1, 1]} : vector<8x96xf32> to vector<8x16xf32>
    %54 = vector.extract_strided_slice %34 {offsets = [0, 48], sizes = [8, 16], strides = [1, 1]} : vector<8x96xf32> to vector<8x16xf32>
    %55 = vector.extract_strided_slice %34 {offsets = [0, 80], sizes = [8, 16], strides = [1, 1]} : vector<8x96xf32> to vector<8x16xf32>
    %cst_25 = arith.constant dense<0.000000e+00> : vector<8x8xf32>
    %56 = tpu.matmul %53, %54, %cst_25 {dimension_numbers = #tpu.dot_dimension_numbers<[1], [1], [0], [0], [0, 0, 1, 0], [], []>} : vector<8x16xf32>, vector<8x16xf32>, vector<8x8xf32> -> vector<8x8xf32>
    %cst_26 = arith.constant 2.500000e-01 : f32
    %57 = vector.broadcast %cst_26 : f32 to vector<8x8xf32>
    %58 = arith.mulf %56, %57 : vector<8x8xf32>
    %59 = arith.addf %58, %27 : vector<8x8xf32>
    %cst_27 = arith.constant dense<0xFF800000> : vector<8xf32>
    %60 = vector.multi_reduction <maximumf>, %59, %cst_27 [1] : vector<8x8xf32> to vector<8xf32>
    %61 = vector.shape_cast %60 : vector<8xf32> to vector<8x1xf32>
    %62 = vector.broadcast %61 : vector<8x1xf32> to vector<8x8xf32>
    %63 = arith.subf %59, %62 : vector<8x8xf32>
    %64 = math.exp %63 : vector<8x8xf32>
    %cst_28 = arith.constant dense<0.000000e+00> : vector<8xf32>
    %65 = vector.multi_reduction <add>, %64, %cst_28 [1] : vector<8x8xf32> to vector<8xf32>
    %66 = vector.shape_cast %65 : vector<8xf32> to vector<8x1xf32>
    %67 = tpu.reciprocal %66 {approx = true} : vector<8x1xf32> -> vector<8x1xf32>
    %68 = vector.broadcast %67 : vector<8x1xf32> to vector<8x8xf32>
    %69 = arith.mulf %64, %68 : vector<8x8xf32>
    %cst_29 = arith.constant dense<0.000000e+00> : vector<8x16xf32>
    %70 = tpu.matmul %69, %55, %cst_29 {dimension_numbers = #tpu.dot_dimension_numbers<[1], [0], [0], [1], [0, 0, 1, 1], [], []>} : vector<8x8xf32>, vector<8x16xf32>, vector<8x16xf32> -> vector<8x16xf32>
    %71 = tpu.concatenate %52, %70 in 1 : vector<8x16xf32>, vector<8x16xf32> -> vector<8x32xf32>
    %c0_30 = arith.constant 0 : index
    %c0_31 = arith.constant 0 : index
    %c0_32 = arith.constant 0 : index
    %72 = vector.load %arg7[%c0_30, %c0_31, %c0_32] : memref<2x32x32xf32, #tpu.memory_space<vmem>>, vector<1x32x32xf32>
    %73 = vector.shape_cast %72 : vector<1x32x32xf32> to vector<32x32xf32>
    %cst_33 = arith.constant dense<0.000000e+00> : vector<8x32xf32>
    %74 = tpu.matmul %71, %73, %cst_33 {dimension_numbers = #tpu.dot_dimension_numbers<[1], [0], [0], [1], [0, 0, 1, 1], [], []>} : vector<8x32xf32>, vector<32x32xf32>, vector<8x32xf32> -> vector<8x32xf32>
    %c0_34 = arith.constant 0 : index
    %c0_35 = arith.constant 0 : index
    %c0_36 = arith.constant 0 : index
    %75 = vector.load %arg8[%c0_34, %c0_35, %c0_36] : memref<2x1x32xf32, #tpu.memory_space<vmem>>, vector<1x1x32xf32>
    %76 = vector.shape_cast %75 : vector<1x1x32xf32> to vector<1x32xf32>
    %77 = vector.broadcast %76 : vector<1x32xf32> to vector<8x32xf32>
    %78 = arith.addf %74, %77 : vector<8x32xf32>
    %79 = arith.addf %78, %25 : vector<8x32xf32>
    %c0_37 = arith.constant 0 : index
    %c0_38 = arith.constant 0 : index
    %c0_39 = arith.constant 0 : index
    %80 = vector.load %arg9[%c0_37, %c0_38, %c0_39] : memref<2x1x32xf32, #tpu.memory_space<vmem>>, vector<1x1x32xf32>
    %81 = vector.shape_cast %80 : vector<1x1x32xf32> to vector<1x32xf32>
    %c0_40 = arith.constant 0 : index
    %c0_41 = arith.constant 0 : index
    %c0_42 = arith.constant 0 : index
    %82 = vector.load %arg10[%c0_40, %c0_41, %c0_42] : memref<2x1x32xf32, #tpu.memory_space<vmem>>, vector<1x1x32xf32>
    %83 = vector.shape_cast %82 : vector<1x1x32xf32> to vector<1x32xf32>
    %cst_43 = arith.constant dense<0.000000e+00> : vector<8xf32>
    %84 = vector.multi_reduction <add>, %79, %cst_43 [1] : vector<8x32xf32> to vector<8xf32>
    %85 = vector.shape_cast %84 : vector<8xf32> to vector<8x1xf32>
    %cst_44 = arith.constant 3.200000e+01 : f32
    %86 = vector.broadcast %cst_44 : f32 to vector<8x1xf32>
    %87 = arith.divf %85, %86 : vector<8x1xf32>
    %88 = vector.broadcast %87 : vector<8x1xf32> to vector<8x32xf32>
    %89 = arith.subf %79, %88 : vector<8x32xf32>
    %90 = arith.mulf %89, %89 : vector<8x32xf32>
    %cst_45 = arith.constant dense<0.000000e+00> : vector<8xf32>
    %91 = vector.multi_reduction <add>, %90, %cst_45 [1] : vector<8x32xf32> to vector<8xf32>
    %92 = vector.shape_cast %91 : vector<8xf32> to vector<8x1xf32>
    %cst_46 = arith.constant 3.200000e+01 : f32
    %93 = vector.broadcast %cst_46 : f32 to vector<8x1xf32>
    %94 = arith.divf %92, %93 : vector<8x1xf32>
    %95 = vector.broadcast %87 : vector<8x1xf32> to vector<8x32xf32>
    %96 = arith.subf %79, %95 : vector<8x32xf32>
    %cst_47 = arith.constant 9.99999997E-7 : f32
    %97 = vector.broadcast %cst_47 : f32 to vector<8x1xf32>
    %98 = arith.addf %94, %97 : vector<8x1xf32>
    %99 = math.rsqrt %98 : vector<8x1xf32>
    %100 = vector.broadcast %99 : vector<8x1xf32> to vector<8x32xf32>
    %101 = arith.mulf %96, %100 : vector<8x32xf32>
    %102 = vector.broadcast %81 : vector<1x32xf32> to vector<8x32xf32>
    %103 = arith.mulf %101, %102 : vector<8x32xf32>
    %104 = vector.broadcast %83 : vector<1x32xf32> to vector<8x32xf32>
    %105 = arith.addf %103, %104 : vector<8x32xf32>
    %c0_48 = arith.constant 0 : index
    %c0_49 = arith.constant 0 : index
    %c0_50 = arith.constant 0 : index
    %106 = vector.load %arg11[%c0_48, %c0_49, %c0_50] : memref<2x32x64xf32, #tpu.memory_space<vmem>>, vector<1x32x64xf32>
    %107 = vector.shape_cast %106 : vector<1x32x64xf32> to vector<32x64xf32>
    %cst_51 = arith.constant dense<0.000000e+00> : vector<8x64xf32>
    %108 = tpu.matmul %105, %107, %cst_51 {dimension_numbers = #tpu.dot_dimension_numbers<[1], [0], [0], [1], [0, 0, 1, 1], [], []>} : vector<8x32xf32>, vector<32x64xf32>, vector<8x64xf32> -> vector<8x64xf32>
    %c0_52 = arith.constant 0 : index
    %c0_53 = arith.constant 0 : index
    %c0_54 = arith.constant 0 : index
    %109 = vector.load %arg12[%c0_52, %c0_53, %c0_54] : memref<2x1x64xf32, #tpu.memory_space<vmem>>, vector<1x1x64xf32>
    %110 = vector.shape_cast %109 : vector<1x1x64xf32> to vector<1x64xf32>
    %111 = vector.broadcast %110 : vector<1x64xf32> to vector<8x64xf32>
    %112 = arith.addf %108, %111 : vector<8x64xf32>
    %cst_55 = arith.constant 5.000000e-01 : f32
    %113 = vector.broadcast %cst_55 : f32 to vector<8x64xf32>
    %114 = arith.mulf %113, %112 : vector<8x64xf32>
    %cst_56 = arith.constant 4.471500e-02 : f32
    %115 = vector.broadcast %cst_56 : f32 to vector<8x64xf32>
    %116 = arith.mulf %115, %112 : vector<8x64xf32>
    %117 = arith.mulf %116, %112 : vector<8x64xf32>
    %118 = arith.mulf %117, %112 : vector<8x64xf32>
    %119 = arith.addf %112, %118 : vector<8x64xf32>
    %cst_57 = arith.constant 0.797884583 : f32
    %120 = vector.broadcast %cst_57 : f32 to vector<8x64xf32>
    %121 = arith.mulf %120, %119 : vector<8x64xf32>
    %122 = math.tanh %121 : vector<8x64xf32>
    %cst_58 = arith.constant 1.000000e+00 : f32
    %123 = vector.broadcast %cst_58 : f32 to vector<8x64xf32>
    %124 = arith.addf %123, %122 : vector<8x64xf32>
    %125 = arith.mulf %114, %124 : vector<8x64xf32>
    %c0_59 = arith.constant 0 : index
    %c0_60 = arith.constant 0 : index
    %c0_61 = arith.constant 0 : index
    %126 = vector.load %arg13[%c0_59, %c0_60, %c0_61] : memref<2x64x32xf32, #tpu.memory_space<vmem>>, vector<1x64x32xf32>
    %127 = vector.shape_cast %126 : vector<1x64x32xf32> to vector<64x32xf32>
    %cst_62 = arith.constant dense<0.000000e+00> : vector<8x32xf32>
    %128 = tpu.matmul %125, %127, %cst_62 {dimension_numbers = #tpu.dot_dimension_numbers<[1], [0], [0], [1], [0, 0, 1, 1], [], []>} : vector<8x64xf32>, vector<64x32xf32>, vector<8x32xf32> -> vector<8x32xf32>
    %c0_63 = arith.constant 0 : index
    %c0_64 = arith.constant 0 : index
    %c0_65 = arith.constant 0 : index
    %129 = vector.load %arg14[%c0_63, %c0_64, %c0_65] : memref<2x1x32xf32, #tpu.memory_space<vmem>>, vector<1x1x32xf32>
    %130 = vector.shape_cast %129 : vector<1x1x32xf32> to vector<1x32xf32>
    %131 = vector.broadcast %130 : vector<1x32xf32> to vector<8x32xf32>
    %132 = arith.addf %128, %131 : vector<8x32xf32>
    %133 = arith.addf %132, %105 : vector<8x32xf32>
    %c0_66 = arith.constant 0 : index
    %c0_67 = arith.constant 0 : index
    %c0_68 = arith.constant 0 : index
    %134 = vector.load %arg15[%c0_66, %c0_67, %c0_68] : memref<2x1x32xf32, #tpu.memory_space<vmem>>, vector<1x1x32xf32>
    %135 = vector.shape_cast %134 : vector<1x1x32xf32> to vector<1x32xf32>
    %c0_69 = arith.constant 0 : index
    %c0_70 = arith.constant 0 : index
    %c0_71 = arith.constant 0 : index
    %136 = vector.load %arg16[%c0_69, %c0_70, %c0_71] : memref<2x1x32xf32, #tpu.memory_space<vmem>>, vector<1x1x32xf32>
    %137 = vector.shape_cast %136 : vector<1x1x32xf32> to vector<1x32xf32>
    %cst_72 = arith.constant dense<0.000000e+00> : vector<8xf32>
    %138 = vector.multi_reduction <add>, %133, %cst_72 [1] : vector<8x32xf32> to vector<8xf32>
    %139 = vector.shape_cast %138 : vector<8xf32> to vector<8x1xf32>
    %cst_73 = arith.constant 3.200000e+01 : f32
    %140 = vector.broadcast %cst_73 : f32 to vector<8x1xf32>
    %141 = arith.divf %139, %140 : vector<8x1xf32>
    %142 = vector.broadcast %141 : vector<8x1xf32> to vector<8x32xf32>
    %143 = arith.subf %133, %142 : vector<8x32xf32>
    %144 = arith.mulf %143, %143 : vector<8x32xf32>
    %cst_74 = arith.constant dense<0.000000e+00> : vector<8xf32>
    %145 = vector.multi_reduction <add>, %144, %cst_74 [1] : vector<8x32xf32> to vector<8xf32>
    %146 = vector.shape_cast %145 : vector<8xf32> to vector<8x1xf32>
    %cst_75 = arith.constant 3.200000e+01 : f32
    %147 = vector.broadcast %cst_75 : f32 to vector<8x1xf32>
    %148 = arith.divf %146, %147 : vector<8x1xf32>
    %149 = vector.broadcast %141 : vector<8x1xf32> to vector<8x32xf32>
    %150 = arith.subf %133, %149 : vector<8x32xf32>
    %cst_76 = arith.constant 9.99999997E-7 : f32
    %151 = vector.broadcast %cst_76 : f32 to vector<8x1xf32>
    %152 = arith.addf %148, %151 : vector<8x1xf32>
    %153 = math.rsqrt %152 : vector<8x1xf32>
    %154 = vector.broadcast %153 : vector<8x1xf32> to vector<8x32xf32>
    %155 = arith.mulf %150, %154 : vector<8x32xf32>
    %156 = vector.broadcast %135 : vector<1x32xf32> to vector<8x32xf32>
    %157 = arith.mulf %155, %156 : vector<8x32xf32>
    %158 = vector.broadcast %137 : vector<1x32xf32> to vector<8x32xf32>
    %159 = arith.addf %157, %158 : vector<8x32xf32>
    %c1 = arith.constant 1 : index
    %c0_77 = arith.constant 0 : index
    %c0_78 = arith.constant 0 : index
    %160 = vector.load %arg5[%c1, %c0_77, %c0_78] : memref<2x32x96xf32, #tpu.memory_space<vmem>>, vector<1x32x96xf32>
    %161 = vector.shape_cast %160 : vector<1x32x96xf32> to vector<32x96xf32>
    %cst_79 = arith.constant dense<0.000000e+00> : vector<8x96xf32>
    %162 = tpu.matmul %159, %161, %cst_79 {dimension_numbers = #tpu.dot_dimension_numbers<[1], [0], [0], [1], [0, 0, 1, 1], [], []>} : vector<8x32xf32>, vector<32x96xf32>, vector<8x96xf32> -> vector<8x96xf32>
    %c1_80 = arith.constant 1 : index
    %c0_81 = arith.constant 0 : index
    %c0_82 = arith.constant 0 : index
    %163 = vector.load %arg6[%c1_80, %c0_81, %c0_82] : memref<2x1x96xf32, #tpu.memory_space<vmem>>, vector<1x1x96xf32>
    %164 = vector.shape_cast %163 : vector<1x1x96xf32> to vector<1x96xf32>
    %165 = vector.broadcast %164 : vector<1x96xf32> to vector<8x96xf32>
    %166 = arith.addf %162, %165 : vector<8x96xf32>
    %167 = vector.extract_strided_slice %166 {offsets = [0, 0], sizes = [8, 16], strides = [1, 1]} : vector<8x96xf32> to vector<8x16xf32>
    %168 = vector.extract_strided_slice %166 {offsets = [0, 32], sizes = [8, 16], strides = [1, 1]} : vector<8x96xf32> to vector<8x16xf32>
    %169 = vector.extract_strided_slice %166 {offsets = [0, 64], sizes = [8, 16], strides = [1, 1]} : vector<8x96xf32> to vector<8x16xf32>
    %cst_83 = arith.constant dense<0.000000e+00> : vector<8x8xf32>
    %170 = tpu.matmul %167, %168, %cst_83 {dimension_numbers = #tpu.dot_dimension_numbers<[1], [1], [0], [0], [0, 0, 1, 0], [], []>} : vector<8x16xf32>, vector<8x16xf32>, vector<8x8xf32> -> vector<8x8xf32>
    %cst_84 = arith.constant 2.500000e-01 : f32
    %171 = vector.broadcast %cst_84 : f32 to vector<8x8xf32>
    %172 = arith.mulf %170, %171 : vector<8x8xf32>
    %173 = arith.addf %172, %27 : vector<8x8xf32>
    %cst_85 = arith.constant dense<0xFF800000> : vector<8xf32>
    %174 = vector.multi_reduction <maximumf>, %173, %cst_85 [1] : vector<8x8xf32> to vector<8xf32>
    %175 = vector.shape_cast %174 : vector<8xf32> to vector<8x1xf32>
    %176 = vector.broadcast %175 : vector<8x1xf32> to vector<8x8xf32>
    %177 = arith.subf %173, %176 : vector<8x8xf32>
    %178 = math.exp %177 : vector<8x8xf32>
    %cst_86 = arith.constant dense<0.000000e+00> : vector<8xf32>
    %179 = vector.multi_reduction <add>, %178, %cst_86 [1] : vector<8x8xf32> to vector<8xf32>
    %180 = vector.shape_cast %179 : vector<8xf32> to vector<8x1xf32>
    %181 = tpu.reciprocal %180 {approx = true} : vector<8x1xf32> -> vector<8x1xf32>
    %182 = vector.broadcast %181 : vector<8x1xf32> to vector<8x8xf32>
    %183 = arith.mulf %178, %182 : vector<8x8xf32>
    %cst_87 = arith.constant dense<0.000000e+00> : vector<8x16xf32>
    %184 = tpu.matmul %183, %169, %cst_87 {dimension_numbers = #tpu.dot_dimension_numbers<[1], [0], [0], [1], [0, 0, 1, 1], [], []>} : vector<8x8xf32>, vector<8x16xf32>, vector<8x16xf32> -> vector<8x16xf32>
    %185 = vector.extract_strided_slice %166 {offsets = [0, 16], sizes = [8, 16], strides = [1, 1]} : vector<8x96xf32> to vector<8x16xf32>
    %186 = vector.extract_strided_slice %166 {offsets = [0, 48], sizes = [8, 16], strides = [1, 1]} : vector<8x96xf32> to vector<8x16xf32>
    %187 = vector.extract_strided_slice %166 {offsets = [0, 80], sizes = [8, 16], strides = [1, 1]} : vector<8x96xf32> to vector<8x16xf32>
    %cst_88 = arith.constant dense<0.000000e+00> : vector<8x8xf32>
    %188 = tpu.matmul %185, %186, %cst_88 {dimension_numbers = #tpu.dot_dimension_numbers<[1], [1], [0], [0], [0, 0, 1, 0], [], []>} : vector<8x16xf32>, vector<8x16xf32>, vector<8x8xf32> -> vector<8x8xf32>
    %cst_89 = arith.constant 2.500000e-01 : f32
    %189 = vector.broadcast %cst_89 : f32 to vector<8x8xf32>
    %190 = arith.mulf %188, %189 : vector<8x8xf32>
    %191 = arith.addf %190, %27 : vector<8x8xf32>
    %cst_90 = arith.constant dense<0xFF800000> : vector<8xf32>
    %192 = vector.multi_reduction <maximumf>, %191, %cst_90 [1] : vector<8x8xf32> to vector<8xf32>
    %193 = vector.shape_cast %192 : vector<8xf32> to vector<8x1xf32>
    %194 = vector.broadcast %193 : vector<8x1xf32> to vector<8x8xf32>
    %195 = arith.subf %191, %194 : vector<8x8xf32>
    %196 = math.exp %195 : vector<8x8xf32>
    %cst_91 = arith.constant dense<0.000000e+00> : vector<8xf32>
    %197 = vector.multi_reduction <add>, %196, %cst_91 [1] : vector<8x8xf32> to vector<8xf32>
    %198 = vector.shape_cast %197 : vector<8xf32> to vector<8x1xf32>
    %199 = tpu.reciprocal %198 {approx = true} : vector<8x1xf32> -> vector<8x1xf32>
    %200 = vector.broadcast %199 : vector<8x1xf32> to vector<8x8xf32>
    %201 = arith.mulf %196, %200 : vector<8x8xf32>
    %cst_92 = arith.constant dense<0.000000e+00> : vector<8x16xf32>
    %202 = tpu.matmul %201, %187, %cst_92 {dimension_numbers = #tpu.dot_dimension_numbers<[1], [0], [0], [1], [0, 0, 1, 1], [], []>} : vector<8x8xf32>, vector<8x16xf32>, vector<8x16xf32> -> vector<8x16xf32>
    %203 = tpu.concatenate %184, %202 in 1 : vector<8x16xf32>, vector<8x16xf32> -> vector<8x32xf32>
    %c1_93 = arith.constant 1 : index
    %c0_94 = arith.constant 0 : index
    %c0_95 = arith.constant 0 : index
    %204 = vector.load %arg7[%c1_93, %c0_94, %c0_95] : memref<2x32x32xf32, #tpu.memory_space<vmem>>, vector<1x32x32xf32>
    %205 = vector.shape_cast %204 : vector<1x32x32xf32> to vector<32x32xf32>
    %cst_96 = arith.constant dense<0.000000e+00> : vector<8x32xf32>
    %206 = tpu.matmul %203, %205, %cst_96 {dimension_numbers = #tpu.dot_dimension_numbers<[1], [0], [0], [1], [0, 0, 1, 1], [], []>} : vector<8x32xf32>, vector<32x32xf32>, vector<8x32xf32> -> vector<8x32xf32>
    %c1_97 = arith.constant 1 : index
    %c0_98 = arith.constant 0 : index
    %c0_99 = arith.constant 0 : index
    %207 = vector.load %arg8[%c1_97, %c0_98, %c0_99] : memref<2x1x32xf32, #tpu.memory_space<vmem>>, vector<1x1x32xf32>
    %208 = vector.shape_cast %207 : vector<1x1x32xf32> to vector<1x32xf32>
    %209 = vector.broadcast %208 : vector<1x32xf32> to vector<8x32xf32>
    %210 = arith.addf %206, %209 : vector<8x32xf32>
    %211 = arith.addf %210, %159 : vector<8x32xf32>
    %c1_100 = arith.constant 1 : index
    %c0_101 = arith.constant 0 : index
    %c0_102 = arith.constant 0 : index
    %212 = vector.load %arg9[%c1_100, %c0_101, %c0_102] : memref<2x1x32xf32, #tpu.memory_space<vmem>>, vector<1x1x32xf32>
    %213 = vector.shape_cast %212 : vector<1x1x32xf32> to vector<1x32xf32>
    %c1_103 = arith.constant 1 : index
    %c0_104 = arith.constant 0 : index
    %c0_105 = arith.constant 0 : index
    %214 = vector.load %arg10[%c1_103, %c0_104, %c0_105] : memref<2x1x32xf32, #tpu.memory_space<vmem>>, vector<1x1x32xf32>
    %215 = vector.shape_cast %214 : vector<1x1x32xf32> to vector<1x32xf32>
    %cst_106 = arith.constant dense<0.000000e+00> : vector<8xf32>
    %216 = vector.multi_reduction <add>, %211, %cst_106 [1] : vector<8x32xf32> to vector<8xf32>
    %217 = vector.shape_cast %216 : vector<8xf32> to vector<8x1xf32>
    %cst_107 = arith.constant 3.200000e+01 : f32
    %218 = vector.broadcast %cst_107 : f32 to vector<8x1xf32>
    %219 = arith.divf %217, %218 : vector<8x1xf32>
    %220 = vector.broadcast %219 : vector<8x1xf32> to vector<8x32xf32>
    %221 = arith.subf %211, %220 : vector<8x32xf32>
    %222 = arith.mulf %221, %221 : vector<8x32xf32>
    %cst_108 = arith.constant dense<0.000000e+00> : vector<8xf32>
    %223 = vector.multi_reduction <add>, %222, %cst_108 [1] : vector<8x32xf32> to vector<8xf32>
    %224 = vector.shape_cast %223 : vector<8xf32> to vector<8x1xf32>
    %cst_109 = arith.constant 3.200000e+01 : f32
    %225 = vector.broadcast %cst_109 : f32 to vector<8x1xf32>
    %226 = arith.divf %224, %225 : vector<8x1xf32>
    %227 = vector.broadcast %219 : vector<8x1xf32> to vector<8x32xf32>
    %228 = arith.subf %211, %227 : vector<8x32xf32>
    %cst_110 = arith.constant 9.99999997E-7 : f32
    %229 = vector.broadcast %cst_110 : f32 to vector<8x1xf32>
    %230 = arith.addf %226, %229 : vector<8x1xf32>
    %231 = math.rsqrt %230 : vector<8x1xf32>
    %232 = vector.broadcast %231 : vector<8x1xf32> to vector<8x32xf32>
    %233 = arith.mulf %228, %232 : vector<8x32xf32>
    %234 = vector.broadcast %213 : vector<1x32xf32> to vector<8x32xf32>
    %235 = arith.mulf %233, %234 : vector<8x32xf32>
    %236 = vector.broadcast %215 : vector<1x32xf32> to vector<8x32xf32>
    %237 = arith.addf %235, %236 : vector<8x32xf32>
    %c1_111 = arith.constant 1 : index
    %c0_112 = arith.constant 0 : index
    %c0_113 = arith.constant 0 : index
    %238 = vector.load %arg11[%c1_111, %c0_112, %c0_113] : memref<2x32x64xf32, #tpu.memory_space<vmem>>, vector<1x32x64xf32>
    %239 = vector.shape_cast %238 : vector<1x32x64xf32> to vector<32x64xf32>
    %cst_114 = arith.constant dense<0.000000e+00> : vector<8x64xf32>
    %240 = tpu.matmul %237, %239, %cst_114 {dimension_numbers = #tpu.dot_dimension_numbers<[1], [0], [0], [1], [0, 0, 1, 1], [], []>} : vector<8x32xf32>, vector<32x64xf32>, vector<8x64xf32> -> vector<8x64xf32>
    %c1_115 = arith.constant 1 : index
    %c0_116 = arith.constant 0 : index
    %c0_117 = arith.constant 0 : index
    %241 = vector.load %arg12[%c1_115, %c0_116, %c0_117] : memref<2x1x64xf32, #tpu.memory_space<vmem>>, vector<1x1x64xf32>
    %242 = vector.shape_cast %241 : vector<1x1x64xf32> to vector<1x64xf32>
    %243 = vector.broadcast %242 : vector<1x64xf32> to vector<8x64xf32>
    %244 = arith.addf %240, %243 : vector<8x64xf32>
    %cst_118 = arith.constant 5.000000e-01 : f32
    %245 = vector.broadcast %cst_118 : f32 to vector<8x64xf32>
    %246 = arith.mulf %245, %244 : vector<8x64xf32>
    %cst_119 = arith.constant 4.471500e-02 : f32
    %247 = vector.broadcast %cst_119 : f32 to vector<8x64xf32>
    %248 = arith.mulf %247, %244 : vector<8x64xf32>
    %249 = arith.mulf %248, %244 : vector<8x64xf32>
    %250 = arith.mulf %249, %244 : vector<8x64xf32>
    %251 = arith.addf %244, %250 : vector<8x64xf32>
    %cst_120 = arith.constant 0.797884583 : f32
    %252 = vector.broadcast %cst_120 : f32 to vector<8x64xf32>
    %253 = arith.mulf %252, %251 : vector<8x64xf32>
    %254 = math.tanh %253 : vector<8x64xf32>
    %cst_121 = arith.constant 1.000000e+00 : f32
    %255 = vector.broadcast %cst_121 : f32 to vector<8x64xf32>
    %256 = arith.addf %255, %254 : vector<8x64xf32>
    %257 = arith.mulf %246, %256 : vector<8x64xf32>
    %c1_122 = arith.constant 1 : index
    %c0_123 = arith.constant 0 : index
    %c0_124 = arith.constant 0 : index
    %258 = vector.load %arg13[%c1_122, %c0_123, %c0_124] : memref<2x64x32xf32, #tpu.memory_space<vmem>>, vector<1x64x32xf32>
    %259 = vector.shape_cast %258 : vector<1x64x32xf32> to vector<64x32xf32>
    %cst_125 = arith.constant dense<0.000000e+00> : vector<8x32xf32>
    %260 = tpu.matmul %257, %259, %cst_125 {dimension_numbers = #tpu.dot_dimension_numbers<[1], [0], [0], [1], [0, 0, 1, 1], [], []>} : vector<8x64xf32>, vector<64x32xf32>, vector<8x32xf32> -> vector<8x32xf32>
    %c1_126 = arith.constant 1 : index
    %c0_127 = arith.constant 0 : index
    %c0_128 = arith.constant 0 : index
    %261 = vector.load %arg14[%c1_126, %c0_127, %c0_128] : memref<2x1x32xf32, #tpu.memory_space<vmem>>, vector<1x1x32xf32>
    %262 = vector.shape_cast %261 : vector<1x1x32xf32> to vector<1x32xf32>
    %263 = vector.broadcast %262 : vector<1x32xf32> to vector<8x32xf32>
    %264 = arith.addf %260, %263 : vector<8x32xf32>
    %265 = arith.addf %264, %237 : vector<8x32xf32>
    %c1_129 = arith.constant 1 : index
    %c0_130 = arith.constant 0 : index
    %c0_131 = arith.constant 0 : index
    %266 = vector.load %arg15[%c1_129, %c0_130, %c0_131] : memref<2x1x32xf32, #tpu.memory_space<vmem>>, vector<1x1x32xf32>
    %267 = vector.shape_cast %266 : vector<1x1x32xf32> to vector<1x32xf32>
    %c1_132 = arith.constant 1 : index
    %c0_133 = arith.constant 0 : index
    %c0_134 = arith.constant 0 : index
    %268 = vector.load %arg16[%c1_132, %c0_133, %c0_134] : memref<2x1x32xf32, #tpu.memory_space<vmem>>, vector<1x1x32xf32>
    %269 = vector.shape_cast %268 : vector<1x1x32xf32> to vector<1x32xf32>
    %cst_135 = arith.constant dense<0.000000e+00> : vector<8xf32>
    %270 = vector.multi_reduction <add>, %265, %cst_135 [1] : vector<8x32xf32> to vector<8xf32>
    %271 = vector.shape_cast %270 : vector<8xf32> to vector<8x1xf32>
    %cst_136 = arith.constant 3.200000e+01 : f32
    %272 = vector.broadcast %cst_136 : f32 to vector<8x1xf32>
    %273 = arith.divf %271, %272 : vector<8x1xf32>
    %274 = vector.broadcast %273 : vector<8x1xf32> to vector<8x32xf32>
    %275 = arith.subf %265, %274 : vector<8x32xf32>
    %276 = arith.mulf %275, %275 : vector<8x32xf32>
    %cst_137 = arith.constant dense<0.000000e+00> : vector<8xf32>
    %277 = vector.multi_reduction <add>, %276, %cst_137 [1] : vector<8x32xf32> to vector<8xf32>
    %278 = vector.shape_cast %277 : vector<8xf32> to vector<8x1xf32>
    %cst_138 = arith.constant 3.200000e+01 : f32
    %279 = vector.broadcast %cst_138 : f32 to vector<8x1xf32>
    %280 = arith.divf %278, %279 : vector<8x1xf32>
    %281 = vector.broadcast %273 : vector<8x1xf32> to vector<8x32xf32>
    %282 = arith.subf %265, %281 : vector<8x32xf32>
    %cst_139 = arith.constant 9.99999997E-7 : f32
    %283 = vector.broadcast %cst_139 : f32 to vector<8x1xf32>
    %284 = arith.addf %280, %283 : vector<8x1xf32>
    %285 = math.rsqrt %284 : vector<8x1xf32>
    %286 = vector.broadcast %285 : vector<8x1xf32> to vector<8x32xf32>
    %287 = arith.mulf %282, %286 : vector<8x32xf32>
    %288 = vector.broadcast %267 : vector<1x32xf32> to vector<8x32xf32>
    %289 = arith.mulf %287, %288 : vector<8x32xf32>
    %290 = vector.broadcast %269 : vector<1x32xf32> to vector<8x32xf32>
    %291 = arith.addf %289, %290 : vector<8x32xf32>
    %c0_140 = arith.constant 0 : index
    %c0_141 = arith.constant 0 : index
    %292 = vector.load %arg19[%c0_140, %c0_141] : memref<32x16xf32, #tpu.memory_space<vmem>>, vector<32x16xf32>
    %cst_142 = arith.constant dense<0.000000e+00> : vector<8x16xf32>
    %293 = tpu.matmul %291, %292, %cst_142 {dimension_numbers = #tpu.dot_dimension_numbers<[1], [0], [0], [1], [0, 0, 1, 1], [], []>} : vector<8x32xf32>, vector<32x16xf32>, vector<8x16xf32> -> vector<8x16xf32>
    %c0_143 = arith.constant 0 : index
    %c0_144 = arith.constant 0 : index
    %294 = vector.load %arg20[%c0_143, %c0_144] : memref<1x16xf32, #tpu.memory_space<vmem>>, vector<1x16xf32>
    %295 = vector.broadcast %294 : vector<1x16xf32> to vector<8x16xf32>
    %296 = arith.addf %293, %295 : vector<8x16xf32>
    %cst_145 = arith.constant 0.000000e+00 : f32
    %297 = vector.broadcast %cst_145 : f32 to vector<8x16xf32>
    %298 = arith.maximumf %296, %297 : vector<8x16xf32>
    %c0_146 = arith.constant 0 : index
    %c0_147 = arith.constant 0 : index
    %299 = vector.load %arg21[%c0_146, %c0_147] : memref<16x128xf32, #tpu.memory_space<vmem>>, vector<16x128xf32>
    %cst_148 = arith.constant dense<0.000000e+00> : vector<8x128xf32>
    %300 = tpu.matmul %298, %299, %cst_148 {dimension_numbers = #tpu.dot_dimension_numbers<[1], [0], [0], [1], [0, 0, 1, 1], [], []>} : vector<8x16xf32>, vector<16x128xf32>, vector<8x128xf32> -> vector<8x128xf32>
    %c0_149 = arith.constant 0 : index
    %c0_150 = arith.constant 0 : index
    %301 = vector.load %arg22[%c0_149, %c0_150] : memref<1x128xf32, #tpu.memory_space<vmem>>, vector<1x128xf32>
    %302 = vector.broadcast %301 : vector<1x128xf32> to vector<8x128xf32>
    %303 = arith.addf %300, %302 : vector<8x128xf32>
    %c0_151 = arith.constant 0 : index
    %c0_152 = arith.constant 0 : index
    %c0_153 = arith.constant 0 : index
    %304 = vector.load %arg27[%c0_151, %c0_152, %c0_153] : memref<1x8x128xf32, #tpu.memory_space<vmem>>, vector<1x8x128xf32>
    %305 = vector.shape_cast %304 : vector<1x8x128xf32> to vector<8x128xf32>
    %306 = vector.shape_cast %303 : vector<8x128xf32> to vector<1x8x128xf32>
    tpu.vector_store %arg27[%c0_151, %c0_152, %c0_153], %306 {strides = array<i32>} : memref<1x8x128xf32, #tpu.memory_space<vmem>>, vector<1x8x128xf32>,
    %307 = vector.extract_strided_slice %291 {offsets = [0, 0], sizes = [1, 32], strides = [1, 1]} : vector<8x32xf32> to vector<1x32xf32>
    %c0_154 = arith.constant 0 : index
    %c0_155 = arith.constant 0 : index
    %308 = vector.load %arg17[%c0_154, %c0_155] : memref<32x32xf32, #tpu.memory_space<vmem>>, vector<32x32xf32>
    %cst_156 = arith.constant dense<0.000000e+00> : vector<1x32xf32>
    %309 = tpu.matmul %307, %308, %cst_156 {dimension_numbers = #tpu.dot_dimension_numbers<[1], [0], [0], [1], [0, 0, 1, 1], [], []>} : vector<1x32xf32>, vector<32x32xf32>, vector<1x32xf32> -> vector<1x32xf32>
    %c0_157 = arith.constant 0 : index
    %c0_158 = arith.constant 0 : index
    %310 = vector.load %arg18[%c0_157, %c0_158] : memref<1x32xf32, #tpu.memory_space<vmem>>, vector<1x32xf32>
    %311 = arith.addf %309, %310 : vector<1x32xf32>
    %312 = math.tanh %311 : vector<1x32xf32>
    %c0_159 = arith.constant 0 : index
    %c0_160 = arith.constant 0 : index
    %313 = vector.load %arg23[%c0_159, %c0_160] : memref<32x16xf32, #tpu.memory_space<vmem>>, vector<32x16xf32>
    %cst_161 = arith.constant dense<0.000000e+00> : vector<1x16xf32>
    %314 = tpu.matmul %312, %313, %cst_161 {dimension_numbers = #tpu.dot_dimension_numbers<[1], [0], [0], [1], [0, 0, 1, 1], [], []>} : vector<1x32xf32>, vector<32x16xf32>, vector<1x16xf32> -> vector<1x16xf32>
    %c0_162 = arith.constant 0 : index
    %c0_163 = arith.constant 0 : index
    %315 = vector.load %arg24[%c0_162, %c0_163] : memref<1x16xf32, #tpu.memory_space<vmem>>, vector<1x16xf32>
    %316 = arith.addf %314, %315 : vector<1x16xf32>
    %cst_164 = arith.constant 0.000000e+00 : f32
    %317 = vector.broadcast %cst_164 : f32 to vector<1x16xf32>
    %318 = arith.maximumf %316, %317 : vector<1x16xf32>
    %c0_165 = arith.constant 0 : index
    %c0_166 = arith.constant 0 : index
    %319 = vector.load %arg25[%c0_165, %c0_166] : memref<16x128xf32, #tpu.memory_space<vmem>>, vector<16x128xf32>
    %cst_167 = arith.constant dense<0.000000e+00> : vector<1x128xf32>
    %320 = tpu.matmul %318, %319, %cst_167 {dimension_numbers = #tpu.dot_dimension_numbers<[1], [0], [0], [1], [0, 0, 1, 1], [], []>} : vector<1x16xf32>, vector<16x128xf32>, vector<1x128xf32> -> vector<1x128xf32>
    %c0_168 = arith.constant 0 : index
    %c0_169 = arith.constant 0 : index
    %321 = vector.load %arg26[%c0_168, %c0_169] : memref<1x128xf32, #tpu.memory_space<vmem>>, vector<1x128xf32>
    %322 = arith.addf %320, %321 : vector<1x128xf32>
    %c0_170 = arith.constant 0 : index
    %c0_171 = arith.constant 0 : index
    %c0_172 = arith.constant 0 : index
    %323 = vector.load %arg28[%c0_170, %c0_171, %c0_172] : memref<1x1x128xf32, #tpu.memory_space<vmem>>, vector<1x1x128xf32>
    %324 = vector.shape_cast %323 : vector<1x1x128xf32> to vector<1x128xf32>
    %325 = vector.shape_cast %322 : vector<1x128xf32> to vector<1x1x128xf32>
    tpu.vector_store %arg28[%c0_170, %c0_171, %c0_172], %325 {strides = array<i32>} : memref<1x1x128xf32, #tpu.memory_space<vmem>>, vector<1x1x128xf32>,
    return
  }
  func.func @transform_0(%arg0: i32) -> (i32, i32, i32) {
    %c0_i32 = arith.constant 0 : i32
    %c0_i32_0 = arith.constant 0 : i32
    %c0_i32_1 = arith.constant 0 : i32
    return %arg0, %c0_i32, %c0_i32_0 : i32, i32, i32
  }
  func.func @transform_1(%arg0: i32) -> (i32, i32, i32) {
    %c0_i32 = arith.constant 0 : i32
    %c0_i32_0 = arith.constant 0 : i32
    %c0_i32_1 = arith.constant 0 : i32
    return %arg0, %c0_i32, %c0_i32_0 : i32, i32, i32
  }
  func.func @transform_2(%arg0: i32) -> (i32, i32) {
    %c0_i32 = arith.constant 0 : i32
    %c0_i32_0 = arith.constant 0 : i32
    %c0_i32_1 = arith.constant 0 : i32
    return %c0_i32, %c0_i32_0 : i32, i32
  }
  func.func @transform_3(%arg0: i32) -> (i32, i32) {
    %c0_i32 = arith.constant 0 : i32
    %c0_i32_0 = arith.constant 0 : i32
    %c0_i32_1 = arith.constant 0 : i32
    return %c0_i32, %c0_i32_0 : i32, i32
  }
  func.func @transform_4(%arg0: i32) -> (i32, i32, i32) {
    %c0_i32 = arith.constant 0 : i32
    %c0_i32_0 = arith.constant 0 : i32
    %c0_i32_1 = arith.constant 0 : i32
    %c0_i32_2 = arith.constant 0 : i32
    return %c0_i32, %c0_i32_0, %c0_i32_1 : i32, i32, i32
  }
  func.func @transform_5(%arg0: i32) -> (i32, i32, i32) {
    %c0_i32 = arith.constant 0 : i32
    %c0_i32_0 = arith.constant 0 : i32
    %c0_i32_1 = arith.constant 0 : i32
    %c0_i32_2 = arith.constant 0 : i32
    return %c0_i32, %c0_i32_0, %c0_i32_1 : i32, i32, i32
  }
  func.func @transform_6(%arg0: i32) -> (i32, i32, i32) {
    %c0_i32 = arith.constant 0 : i32
    %c0_i32_0 = arith.constant 0 : i32
    %c0_i32_1 = arith.constant 0 : i32
    %c0_i32_2 = arith.constant 0 : i32
    return %c0_i32, %c0_i32_0, %c0_i32_1 : i32, i32, i32
  }
  func.func @transform_7(%arg0: i32) -> (i32, i32, i32) {
    %c0_i32 = arith.constant 0 : i32
    %c0_i32_0 = arith.constant 0 : i32
    %c0_i32_1 = arith.constant 0 : i32
    %c0_i32_2 = arith.constant 0 : i32
    return %c0_i32, %c0_i32_0, %c0_i32_1 : i32, i32, i32
  }
  func.func @transform_8(%arg0: i32) -> (i32, i32, i32) {
    %c0_i32 = arith.constant 0 : i32
    %c0_i32_0 = arith.constant 0 : i32
    %c0_i32_1 = arith.constant 0 : i32
    %c0_i32_2 = arith.constant 0 : i32
    return %c0_i32, %c0_i32_0, %c0_i32_1 : i32, i32, i32
  }
  func.func @transform_9(%arg0: i32) -> (i32, i32, i32) {
    %c0_i32 = arith.constant 0 : i32
    %c0_i32_0 = arith.constant 0 : i32
    %c0_i32_1 = arith.constant 0 : i32
    %c0_i32_2 = arith.constant 0 : i32
    return %c0_i32, %c0_i32_0, %c0_i32_1 : i32, i32, i32
  }
  func.func @transform_10(%arg0: i32) -> (i32, i32, i32) {
    %c0_i32 = arith.constant 0 : i32
    %c0_i32_0 = arith.constant 0 : i32
    %c0_i32_1 = arith.constant 0 : i32
    %c0_i32_2 = arith.constant 0 : i32
    return %c0_i32, %c0_i32_0, %c0_i32_1 : i32, i32, i32
  }
  func.func @transform_11(%arg0: i32) -> (i32, i32, i32) {
    %c0_i32 = arith.constant 0 : i32
    %c0_i32_0 = arith.constant 0 : i32
    %c0_i32_1 = arith.constant 0 : i32
    %c0_i32_2 = arith.constant 0 : i32
    return %c0_i32, %c0_i32_0, %c0_i32_1 : i32, i32, i32
  }
  func.func @transform_12(%arg0: i32) -> (i32, i32, i32) {
    %c0_i32 = arith.constant 0 : i32
    %c0_i32_0 = arith.constant 0 : i32
    %c0_i32_1 = arith.constant 0 : i32
    %c0_i32_2 = arith.constant 0 : i32
    return %c0_i32, %c0_i32_0, %c0_i32_1 : i32, i32, i32
  }
  func.func @transform_13(%arg0: i32) -> (i32, i32, i32) {
    %c0_i32 = arith.constant 0 : i32
    %c0_i32_0 = arith.constant 0 : i32
    %c0_i32_1 = arith.constant 0 : i32
    %c0_i32_2 = arith.constant 0 : i32
    return %c0_i32, %c0_i32_0, %c0_i32_1 : i32, i32, i32
  }
  func.func @transform_14(%arg0: i32) -> (i32, i32, i32) {
    %c0_i32 = arith.constant 0 : i32
    %c0_i32_0 = arith.constant 0 : i32
    %c0_i32_1 = arith.constant 0 : i32
    %c0_i32_2 = arith.constant 0 : i32
    return %c0_i32, %c0_i32_0, %c0_i32_1 : i32, i32, i32
  }
  func.func @transform_15(%arg0: i32) -> (i32, i32, i32) {
    %c0_i32 = arith.constant 0 : i32
    %c0_i32_0 = arith.constant 0 : i32
    %c0_i32_1 = arith.constant 0 : i32
    %c0_i32_2 = arith.constant 0 : i32
    return %c0_i32, %c0_i32_0, %c0_i32_1 : i32, i32, i32
  }
  func.func @transform_16(%arg0: i32) -> (i32, i32) {
    %c0_i32 = arith.constant 0 : i32
    %c0_i32_0 = arith.constant 0 : i32
    %c0_i32_1 = arith.constant 0 : i32
    return %c0_i32, %c0_i32_0 : i32, i32
  }
  func.func @transform_17(%arg0: i32) -> (i32, i32) {
    %c0_i32 = arith.constant 0 : i32
    %c0_i32_0 = arith.constant 0 : i32
    %c0_i32_1 = arith.constant 0 : i32
    return %c0_i32, %c0_i32_0 : i32, i32
  }
  func.func @transform_18(%arg0: i32) -> (i32, i32) {
    %c0_i32 = arith.constant 0 : i32
    %c0_i32_0 = arith.constant 0 : i32
    %c0_i32_1 = arith.constant 0 : i32
    return %c0_i32, %c0_i32_0 : i32, i32
  }
  func.func @transform_19(%arg0: i32) -> (i32, i32) {
    %c0_i32 = arith.constant 0 : i32
    %c0_i32_0 = arith.constant 0 : i32
    %c0_i32_1 = arith.constant 0 : i32
    return %c0_i32, %c0_i32_0 : i32, i32
  }
  func.func @transform_20(%arg0: i32) -> (i32, i32) {
    %c0_i32 = arith.constant 0 : i32
    %c0_i32_0 = arith.constant 0 : i32
    %c0_i32_1 = arith.constant 0 : i32
    return %c0_i32, %c0_i32_0 : i32, i32
  }
  func.func @transform_21(%arg0: i32) -> (i32, i32) {
    %c0_i32 = arith.constant 0 : i32
    %c0_i32_0 = arith.constant 0 : i32
    %c0_i32_1 = arith.constant 0 : i32
    return %c0_i32, %c0_i32_0 : i32, i32
  }
  func.func @transform_22(%arg0: i32) -> (i32, i32) {
    %c0_i32 = arith.constant 0 : i32
    %c0_i32_0 = arith.constant 0 : i32
    %c0_i32_1 = arith.constant 0 : i32
    return %c0_i32, %c0_i32_0 : i32, i32
  }
  func.func @transform_23(%arg0: i32) -> (i32, i32) {
    %c0_i32 = arith.constant 0 : i32
    %c0_i32_0 = arith.constant 0 : i32
    %c0_i32_1 = arith.constant 0 : i32
    return %c0_i32, %c0_i32_0 : i32, i32
  }
  func.func @transform_24(%arg0: i32) -> (i32, i32) {
    %c0_i32 = arith.constant 0 : i32
    %c0_i32_0 = arith.constant 0 : i32
    %c0_i32_1 = arith.constant 0 : i32
    return %c0_i32, %c0_i32_0 : i32, i32
  }
  func.func @transform_25(%arg0: i32) -> (i32, i32) {
    %c0_i32 = arith.constant 0 : i32
    %c0_i32_0 = arith.constant 0 : i32
    %c0_i32_1 = arith.constant 0 : i32
    return %c0_i32, %c0_i32_0 : i32, i32
  }
  func.func @transform_26(%arg0: i32) -> (i32, i32, i32) {
    %c0_i32 = arith.constant 0 : i32
    %c0_i32_0 = arith.constant 0 : i32
    %c0_i32_1 = arith.constant 0 : i32
    return %arg0, %c0_i32, %c0_i32_0 : i32, i32, i32
  }
  func.func @transform_27(%arg0: i32) -> (i32, i32, i32) {
    %c0_i32 = arith.constant 0 : i32
    %c0_i32_0 = arith.constant 0 : i32
    %c0_i32_1 = arith.constant 0 : i32
    return %arg0, %c0_i32, %c0_i32_0 : i32, i32, i32
  }
}

</mosaic_0001>

<bundles_post_ra>
// kernel: joint_bert_forward.1
= control target key start
LH: loop header
LB: loop body
LE: loop exit
PB: predicated region body
PF: predicated region fallthrough
CT: control target
= control target key end

     0   :  { %s4128_s0 = inlined_call_operand.vmem [shape: f32[2,8,32], index: 0, kind: input, shape index: {}]   ;;  %s4129_s1 = inlined_call_operand.vmem [shape: f32[2,8,8], index: 1, kind: input, shape index: {}]   ;;  %s4130_s2 = inlined_call_operand.vmem [shape: f32[1,32], index: 2, kind: input, shape index: {}]   ;;  %s4131_s3 = inlined_call_operand.vmem [shape: f32[1,32], index: 3, kind: input, shape index: {}]   ;;  %s4132_s4 = inlined_call_operand.vmem [shape: f32[2,32,96], index: 4, kind: input, shape index: {}]   ;;  %s4133_s5 = inlined_call_operand.vmem [shape: f32[2,1,96], index: 5, kind: input, shape index: {}]   ;;  %s4134_s6 = inlined_call_operand.vmem [shape: f32[2,32,32], index: 6, kind: input, shape index: {}]   ;;  %s4135_s7 = inlined_call_operand.vmem [shape: f32[2,1,32], index: 7, kind: input, shape index: {}]   ;;  %s4136_s8 = inlined_call_operand.vmem [shape: f32[2,1,32], index: 8, kind: input, shape index: {}]   ;;  %s4137_s9 = inlined_call_operand.vmem [shape: f32[2,1,32], index: 9, kind: input, shape index: {}]   ;;  %s4138_s10 = inlined_call_operand.vmem [shape: f32[2,32,64], index: 10, kind: input, shape index: {}]   ;;  %s4139_s11 = inlined_call_operand.vmem [shape: f32[2,1,64], index: 11, kind: input, shape index: {}]   ;;  %s4140_s12 = inlined_call_operand.vmem [shape: f32[2,64,32], index: 12, kind: input, shape index: {}]   ;;  %s4141_s13 = inlined_call_operand.vmem [shape: f32[2,1,32], index: 13, kind: input, shape index: {}]   ;;  %s4142_s14 = inlined_call_operand.vmem [shape: f32[2,1,32], index: 14, kind: input, shape index: {}]   ;;  %s4143_s15 = inlined_call_operand.vmem [shape: f32[2,1,32], index: 15, kind: input, shape index: {}]   ;;  %s4144_s16 = inlined_call_operand.vmem [shape: f32[32,32], index: 16, kind: input, shape index: {}]   ;;  %s4145_s17 = inlined_call_operand.vmem [shape: f32[1,32], index: 17, kind: input, shape index: {}]   ;;  %s4146_s18 = inlined_call_operand.vmem [shape: f32[32,16], index: 18, kind: input, shape index: {}]   ;;  %s4147_s19 = inlined_call_operand.vmem [shape: f32[1,16], index: 19, kind: input, shape index: {}]   ;;  %s4148_s20 = inlined_call_operand.vmem [shape: f32[16,128], index: 20, kind: input, shape index: {}]   ;;  %s4149_s21 = inlined_call_operand.vmem [shape: f32[1,128], index: 21, kind: input, shape index: {}]   ;;  %s4150_s22 = inlined_call_operand.vmem [shape: f32[32,16], index: 22, kind: input, shape index: {}]   ;;  %s4151_s23 = inlined_call_operand.vmem [shape: f32[1,16], index: 23, kind: input, shape index: {}]   ;;  %s4152_s24 = inlined_call_operand.vmem [shape: f32[16,128], index: 24, kind: input, shape index: {}]   ;;  %s4153_s25 = inlined_call_operand.vmem [shape: f32[1,128], index: 25, kind: input, shape index: {}]   ;;  %s4154_s26 = inlined_call_operand.vmem [shape: f32[2,8,128], index: 26, kind: output, shape index: {0}]   ;;  %s4155_s27 = inlined_call_operand.hbm [shape: f32[2,1,128], index: 27, kind: output, shape index: {1}]  }
   0x1   :  { %4185 = sst [smem:[#allocation12_spill]] %s4128_s0 }
   0x2   :  { %4186 = sst [smem:[#allocation13_spill]] %s4129_s1 }
   0x3   :  { %4187 = sst [smem:[#allocation14_spill]] %s4130_s2 }
   0x4   :  { %4188 = sst [smem:[#allocation15_spill]] %s4131_s3 }
   0x5   :  { %4189 = sst [smem:[#allocation16_spill]] %s4132_s4 }
   0x6   :  { %4190 = sst [smem:[#allocation17_spill]] %s4133_s5 }
   0x7   :  { %4191 = sst [smem:[#allocation18_spill]] %s4134_s6 }
   0x8   :  { %4192 = sst [smem:[#allocation19_spill]] %s4135_s7 }
   0x9   :  { %4193 = sst [smem:[#allocation20_spill]] %s4136_s8 }
   0xa   :  { %4194 = sst [smem:[#allocation21_spill]] %s4137_s9 }
   0xb   :  { %4195 = sst [smem:[#allocation22_spill]] %s4138_s10 }
   0xc   :  { %4196 = sst [smem:[#allocation23_spill]] %s4139_s11 }
   0xd   :  { %4197 = sst [smem:[#allocation24_spill]] %s4151_s23 }
   0xe   :  { %4198 = sst [smem:[#allocation25_spill]] %s4152_s24 }
   0xf   :  { %4199 = sst [smem:[#allocation26_spill]] %s4153_s25 }
  0x10   :  { %4200 = sst [smem:[#allocation27_spill]] %s4155_s27 }
  0x11   :  { %33 = vsyncpa [#allocation3], 0 }
  0x12   :  { %35 = vsyncpa [#allocation3 + $0x1], 0  ;;  %s3631_s7 = smov 0   ;;  %s3633_s4 = smov 0  }
  0x13   :  { %s3635_s8 = smov 0   ;;  %s3637_s30 = smov 0  }
  0x14 LB: > { %4201 = sst [smem:[#allocation5_spill]] %s3467_s7  ;;  %s3652_s9 = sadd.s32 4294967295, %s3479_s30   ;;  %s3479_s30 = sphi %s3637_s30, %s4239_s30   ;;  %s3475_s8 = sphi %s3635_s8, %s4241_s8   ;;  %s3471_s4 = sphi %s3633_s4, %s4243_s4   ;;  %s3467_s7 = sphi %s3631_s7, %s4242_s7  }
  0x15   : > { %4202 = sst [smem:[#allocation6_spill]] %s3475_s8  ;;  %s2894_s5 = sadd.s32 4294967294, %s3479_s30  }
  0x16   : > { %4203 = sst [smem:[#allocation7_spill]] %s3479_s30  ;;  %s3656_s28 = sadd.s32 1, %s3479_s30  }
  0x17   : > { %4204 = sst [smem:[#allocation8_spill]] %s3656_s28  ;;  %s630_s0 = sadd.s32 1, %s3475_s8 }
  0x18   : > { %s627_s10 = ssub.s32 %s3479_s30, %s3656_s28  ;;  %p640_p0 = scmp.ne.s32.totalorder %s3475_s8, %s3471_s4 }
  0x19   : > { %p628_p1 = scmp.eq.s32.totalorder %s627_s10, 0  ;;  %p641_p2 = scmp.eq.s32.totalorder %s3652_s9, 1 }
  0x1a   : > { %p646_p3 = scmp.ne.s32.totalorder %s3471_s4, %s3467_s7  ;;  %p647_p4 = scmp.eq.s32.totalorder %s2894_s5, 1 }
  0x1b   : > { %s3667_s29 = scalar_select %p628_p1, %s3475_s8, %s630_s0  }
  0x1c   : > { %p3669_p5 = por %p641_p2, %p640_p0  ;;  %p3673_p6 = por %p647_p4, %p646_p3 }
  0x1d   : > { %4205 = sst [smem:[#allocation9_spill]] %s3667_s29  ;;  %p2897_p7 = scmp.ge.s32.totalorder %s3479_s30, 1 }
  0x1e   : > { %s4206_s1 = scalar_select %p3669_p5, 1, 0 }
  0x1f   : > { %s4208_s6 = scalar_select %p3673_p6, 1, 0 }
  0x20   : > { %4207 = sst [smem:[#allocation10_spill]] %s4206_s1  ;;  %p751_p8 = scmp.lt.s32.totalorder %s3479_s30, 3 }
  0x21   : > { %4209 = sst [smem:[#allocation11_spill]] %s4208_s6 }
  0x22   : > { %p752_p9 = pnand %p2897_p7, %p751_p8 }
  0x23   : > { %p829_p10 = scmp.lt.s32.totalorder (!%p752_p9), %s3652_s9, 1  ;;  %vm844_vm0 = vcmask (!%p752_p9), 261120   ;;  %s4210_s0 = sld [smem:[#allocation12_spill]] (!%p752_p9)  ;;  %v3481_v10 = vmov (!%p752_p9), 0.0|0.0   ;;  %vm3482_vm1 = vmmov (!%p752_p9), 0   ;;  %v3483_v13 = vmov (!%p752_p9), 0.0  }
  0x24   : > { %755 = sbr.rel (%p752_p9) target bundleno = 6236 (0x185c), region = 124  ;;  %s4211_s8 = sld [smem:[#allocation16_spill]] (!%p752_p9)  ;;  %3253 = vmatprep.subr.bf16.mxu0 (!%p752_p9), %v3481_v10  ;;  %3070 = vmatprep.mubr.msk.f32.mxu0 (!%p752_p9), %vm3482_vm1, %v3483_v13  ;;  %vm961_vm2 = vcmask (!%p752_p9), 130048   ;;  %vm1038_vm3 = vcmask (!%p752_p9), 64512   ;;  %vm1520_vm4 = vcmask (!%p752_p9), 523264  }
  0x25   : > { %3073 = vmatprep.subr.mxu1 (!%p752_p9), %v3483_v13  ;;  %3075 = vmatprep.mubr.msk.f32.mxu1 (!%p752_p9), %vm3482_vm1, %v3483_v13  ;;  %s4213_s29 = sld [smem:[#allocation14_spill]] (!%p752_p9)  ;;  %s4214_s3 = sld [smem:[#allocation15_spill]] (!%p752_p9) }
  0x26   : > { %s4171_s7 = smov (!%p752_p9), 112   ;;  %s4170_s6 = smov (!%p752_p9), 64  }
  0x27   : > { %s4221_s30 = sld [smem:[#allocation20_spill]] (!%p752_p9)  ;;  %s4223_s25 = sld [smem:[#allocation21_spill]] (!%p752_p9) }
  0x28   : > { %s4224_s27 = sld [smem:[#allocation23_spill]] (!%p752_p9)  ;;  %s4226_s23 = smov (!%p752_p9), 96  }
  0x29   : > { %s4227_s24 = smov (!%p752_p9), 112  }
  0x2a   : > { %s4212_s28 = smov (!%p752_p9), %s4211_s8  ;;  %v874_v7 = vld [vmem:[%s4211_s8] sm:$0xff] (!%p752_p9)  ;;  %s4172_s8 = smov (!%p752_p9), 96  }
  0x2b   : > { %s830_s11 = scalar_select %p829_p10, %s3652_s9, 1  ;;  %v875_v8 = vld [vmem:[%s4212_s28 + $0x8] sm:$0xff]  ;;  %v876_v9 = vld [vmem:[%s4212_s28 + $0x10] sm:$0xff]  ;;  %v877_v12 = vld [vmem:[%s4212_s28 + $0x18] sm:$0xff] }
  0x2c   : > { %v3254_v11 = vpack.c.bf16 %v875_v8, %v874_v7  ;;  %v3257_v14 = vpack.c.bf16 %v877_v12, %v876_v9  ;;  %v2901_v19 = vld [vmem:[%s4213_s29] ss:$0 sm:$0xff]  ;;  %s4173_s29 = smov 80  }
  0x2d   : > { %s3681_s2 = sshll.u32 %s830_s11, 3  ;;  %v2902_v21 = vld [vmem:[%s4214_s3] ss:$0 sm:$0xff]  ;;  %s4216_s3 = sld [smem:[#allocation13_spill]] }
  0x2e   : > { %s832_s10 = scalar_lea.vmem %s4210_s0, %s3681_s2  ;;  %3255 = vmatpush3.bf16.msra.mxu0 %v3254_v11  ;;  %s4169_s0 = smov 48  }
  0x2f   : > { %v841_v0 = vld [vmem:[%s832_s10] sm:$0xff]  ;;  %3256 = vmatprep.subr.bf16.mxu0 %v3481_v10  ;;  %s4215_s10 = sld [smem:[#allocation17_spill]]  ;;  %s4222_s1 = smov %s4221_s30 }
  0x30   : > { %v845_v1 = vsel %vm844_vm0, %v841_v0, 0.0  ;;  %s4229_s11 = smov 48  }
  0x31   : > { %846 = vadd.xlane.f32.xlu0 %v845_v1 }
  0x32   : > { %3258 = vmatpush3.bf16.msra.mxu0 %v3257_v14 }
  0x33   : > { %3083 = vmatprep.subr.mxu0 %v3483_v13  ;;  %s836_s5 = scalar_lea.vmem %s4216_s3, %s3681_s2  ;;  %s4220_s3 = sld [smem:[#allocation22_spill]] }
  0x34   : > { %v3741_v31 = vld [vmem:[%s836_s5] sm:$0xff]  ;;  %s4217_s5 = sld [smem:[#allocation18_spill]] }
  0x35   : > { %v2903_v24 = vld [vmem:[%s4215_s10] ss:$0 sm:$0xff] }
  0x3a   : > { %v1298_v60 = vld [vmem:[%s4217_s5] sm:$0xff]  ;;  %v1299_v61 = vld [vmem:[%s4217_s5 + $0x8] sm:$0xff]  ;;  %v1300_v62 = vld [vmem:[%s4217_s5 + $0x10] sm:$0xff] }
  0x3b   : > { %v3260_v63 = vpack.c.bf16 %v1299_v61, %v1298_v60 }
  0xbe   : > { %v847_v2 = vpop.xlane.xlu0 %846 }
  0xbf   : > { %v849_v3 = vmul.f32 0.03125, %v847_v2 }
  0xc1   : > { %v850_v4 = vsub.f32 %v841_v0, %v849_v3  ;;  %v1301_v0 = vld [vmem:[%s4217_s5 + $0x18] sm:$0xff] }
  0xc2   : > { %v3263_v1 = vpack.c.bf16 %v1301_v0, %v1300_v62  ;;  %v2917_v62 = vld [vmem:[%s4141_s13] ss:$0 sm:$0xff] }
  0xc3   : > { %v851_v5 = vmul.f32 %v850_v4, %v850_v4 }
  0xc5   : > { %v852_v6 = vsel %vm844_vm0, %v851_v5, 0.0 }
  0xc6   : > { %853 = vadd.xlane.f32.xlu0 %v852_v6 }
 0x153   : > { %v854_v15 = vpop.xlane.xlu0 %853 }
 0x154   : > { %v855_v16 = vmul.f32 0.03125, %v854_v15 }
 0x156   : > { %v856_v17 = vadd.f32 1e-06, %v855_v16 }
 0x158   : > { %3385 = vrsqrt.f32 %v856_v17 }
 0x162   : > { %v3386_v18 = vpop.eup %3385 }
 0x163   : > { %v858_v20 = vmul.f32 %v3386_v18, %v850_v4 }
 0x165   : > { %v865_v22 = vmul.f32 %v2901_v19, %v858_v20 }
 0x167   : > { %v3715_v23 = vadd.f32 %v2902_v21, %v865_v22  ;;  %v1412_v21 = vld [vmem:[%s4220_s3] sm:$0xff]  ;;  %v1413_v22 = vld [vmem:[%s4220_s3 + $0x8] sm:$0xff] }
 0x169   : > { %3071 = vmatmul.mubr.msk.f32.vlgmr.msra.gmra.mrb[0].mxu0 %vm844_vm0, %v3715_v23 }
 0x16a   : > { %3085 = vmatprep.mubr.msk.f32.mxu0 %vm3482_vm1, %v3483_v13 }
 0x23c   : > { %v954_v25 = vpop.f32.mrb[0].mxu0 }
 0x23d   : > { %v955_v26 = vadd.f32 %v2903_v24, %v954_v25  ;;  %v3072_v27 = vpop.f32.mrb[1].mxu0  ;;  %v3266_v24 = vpack.c.bf16 %v1413_v22, %v1412_v21  ;;  %v1415_v25 = vld [vmem:[%s4220_s3 + $0x18] sm:$0xff]  ;;  %v2919_v21 = vld [vmem:[%s4142_s14] ss:$0 sm:$0xff] }
 0x23f   : > { %1126 = vrot.lane.b32.xlu0 %v955_v26, %s4171_s7  ;;  %959 = vrot.lane.b32.xlu1 %v955_v26, %s4172_s8  ;;  %s4218_s8 = sld [smem:[#allocation19_spill]] }
 0x243   : > { %1128 = vrot.lane.b32.xlu1 %v955_v26, %s4173_s29 }
 0x245   : > { %s4219_s29 = smov %s4218_s8  ;;  %v2911_v8 = vld [vmem:[%s4218_s8] ss:$0 sm:$0xff]  ;;  %s4225_s8 = smov 80  }
 0x2b1   : > { %v960_v28 = vpop.permute.xlu1 %959  ;;  %v1127_v30 = vpop.permute.xlu0 %1126 }
 0x2b2   : > { %3074 = vmatpush3.xpose.msk.msra.mxu1 %vm961_vm2, %v960_v28 }
 0x2b3   : > { %3078 = vmatprep.subr.mxu1 %v3483_v13 }
 0x2b5   : > { %3076 = vmatmul.mubr.msk.f32.vlgmr.msra.gmra.mrb[0].mxu1 %vm961_vm2, %v955_v26  ;;  %v1129_v29 = vpop.permute.xlu1 %1128 }
 0x2b6   : > { %3084 = vmatpush3.xpose.msk.msra.mxu0 %vm961_vm2, %v1129_v29  ;;  %3080 = vmatprep.mubr.msk.f32.mxu1 %vm3482_vm1, %v3483_v13 }
 0x2b7   : > { %3259 = vmatprep.subr.bf16.mxu0 %v3481_v10 }
 0x2b9   : > { %3086 = vmatmul.mubr.msk.f32.vlgmr.msra.gmra.mrb[2].mxu0 %vm961_vm2, %v1127_v30 }
 0x2ba   : > { %3101 = vmatprep.mubr.msk.f32.mxu0 %vm3482_vm1, %v3483_v13  ;;  %3261 = vmatpush3.bf16.msra.mxu0 %v3260_v63 }
 0x2bb   : > { %3262 = vmatprep.subr.bf16.mxu0 %v3481_v10 }
 0x2be   : > { %3264 = vmatpush3.bf16.msra.mxu0 %v3263_v1 }
 0x2bf   : > { %3271 = vmatprep.subr.bf16.mxu0 %v3481_v10 }
 0x388   : > { %v1032_v32 = vpop.f32.mrb[0].mxu1 }
 0x389   : > { %v1036_v33 = vmul.f32 0.25, %v1032_v32  ;;  %v3077_v34 = vpop.f32.mrb[1].mxu1  ;;  %v2913_v32 = vld [vmem:[%s4221_s30] ss:$0 sm:$0xff]  ;;  %s4230_s30 = smov 16  }
 0x38a   : > { %v2914_v34 = vld [vmem:[%s4223_s25] ss:$0 sm:$0xff] }
 0x38b   : > { %v1037_v35 = vadd.f32 %v1036_v33, %v3741_v31 }
 0x38c   : > { %v1200_v36 = vpop.f32.mrb[2].mxu0 }
 0x38d   : > { %v1204_v37 = vmul.f32 0.25, %v1200_v36  ;;  %v3087_v38 = vpop.f32.mrb[3].mxu0  ;;  %v1039_v39 = vsel %vm1038_vm3, %v1037_v35, -inf }
 0x38e   : > { %1040 = vmax.xlane.f32.xlu1 %v1039_v39  ;;  %v1506_v38 = vld [vmem:[%s4140_s12 + $0x8] sm:$0xff] }
 0x38f   : > { %v1205_v40 = vadd.f32 %v1204_v37, %v3741_v31  ;;  %v1505_v37 = vld [vmem:[%s4140_s12] sm:$0xff] }
 0x390   : > { %v3272_v39 = vpack.c.bf16 %v1506_v38, %v1505_v37 }
 0x391   : > { %v1206_v41 = vsel %vm1038_vm3, %v1205_v40, -inf }
 0x392   : > { %1207 = vmax.xlane.f32.xlu0 %v1206_v41  ;;  %v1508_v41 = vld [vmem:[%s4140_s12 + $0x18] sm:$0xff] }
 0x3a8   : > { %1217 = vrot.lane.b32.xlu0 %v955_v26, %s4169_s0  ;;  %s4175_s0 = smov 16  }
 0x41b   : > { %v1041_v42 = vpop.xlane.xlu1 %1040 }
 0x41c   : > { %v1042_v43 = vsub.f32 %v1037_v35, %v1041_v42 }
 0x41e   : > { %v1043_v44 = vmul.f32 1.442695, %v1042_v43  ;;  %v1509_v43 = vld [vmem:[%s4140_s12 + $0x20] sm:$0xff] }
 0x41f   : > { %v1208_v45 = vpop.xlane.xlu0 %1207 }
 0x420   : > { %3387 = vpow2.f32 %v1043_v44  ;;  %v1209_v46 = vsub.f32 %v1205_v40, %v1208_v45  ;;  %v1507_v40 = vld [vmem:[%s4140_s12 + $0x10] sm:$0xff]  ;;  %v1510_v44 = vld [vmem:[%s4140_s12 + $0x28] sm:$0xff] }
 0x421   : > { %v3275_v42 = vpack.c.bf16 %v1508_v41, %v1507_v40  ;;  %v3278_v45 = vpack.c.bf16 %v1510_v44, %v1509_v43 }
 0x422   : > { %v1210_v47 = vmul.f32 1.442695, %v1209_v46  ;;  %v1511_v46 = vld [vmem:[%s4140_s12 + $0x30] sm:$0xff] }
 0x423   : > { %v1218_v57 = vpop.permute.xlu0 %1217 }
 0x424   : > { %3389 = vpow2.f32 %v1210_v47  ;;  %v1512_v47 = vld [vmem:[%s4140_s12 + $0x38] sm:$0xff] }
 0x42a   : > { %v3388_v48 = vpop.eup %3387 }
 0x42b   : > { %v1045_v49 = vsel %vm1038_vm3, %v3388_v48, 0.0 }
 0x42c   : > { %1046 = vadd.xlane.f32.xlu1 %v1045_v49  ;;  %v2915_v49 = vld [vmem:[%s4224_s27] ss:$0 sm:$0xff] }
 0x42e   : > { %v3390_v50 = vpop.eup %3389 }
 0x42f   : > { %v1212_v51 = vsel %vm1038_vm3, %v3390_v50, 0.0 }
 0x430   : > { %1213 = vadd.xlane.f32.xlu1 %v1212_v51 }
 0x441   : > { %1050 = vrot.lane.b32.xlu1 %v955_v26, %s4170_s6  ;;  %s4228_s6 = smov 64  }
 0x4b9   : > { %v1047_v52 = vpop.xlane.xlu1 %1046 }
 0x4ba   : > { %3391 = vrcp.f32 %v1047_v52 }
 0x4bd   : > { %v1214_v53 = vpop.xlane.xlu1 %1213 }
 0x4be   : > { %3393 = vrcp.f32 %v1214_v53 }
 0x4c1   : > { %v1051_v54 = vpop.permute.xlu1 %1050 }
 0x4c2   : > { %3079 = vmatpush3.msra.mxu1 %v1051_v54 }
 0x4c3   : > { %3088 = vmatprep.subr.mxu1 %v3483_v13 }
 0x4c4   : > { %v3392_v55 = vpop.eup %3391 }
 0x4c5   : > { %v1049_v56 = vmul.f32 %v3392_v55, %v3388_v48  ;;  %v3281_v48 = vpack.c.bf16 %v1512_v47, %v1511_v46 }
 0x4c7   : > { %3081 = vmatmul.mubr.msk.f32.vlgmr.msra.gmra.mrb[2].mxu1 %vm1038_vm3, %v1049_v56 }
 0x4c8   : > { %v3394_v58 = vpop.eup %3393  ;;  %3089 = vmatpush3.msra.mxu1 %v1218_v57  ;;  %3090 = vmatprep.mubr.msk.f32.mxu1 %vm3482_vm1, %v3483_v13 }
 0x4c9   : > { %v1216_v59 = vmul.f32 %v3394_v58, %v3390_v50  ;;  %3265 = vmatprep.subr.bf16.mxu1 %v3481_v10 }
 0x4cb   : > { %3091 = vmatmul.mubr.msk.f32.vlgmr.msra.gmra.mrb[4].mxu1 %vm1038_vm3, %v1216_v59 }
 0x4cc   : > { %3112 = vmatprep.mubr.msk.f32.mxu1 %vm3482_vm1, %v3483_v13  ;;  %3267 = vmatpush3.bf16.msra.mxu1 %v3266_v24  ;;  %v2920_v24 = vld [vmem:[%s4143_s15] ss:$0 sm:$0xff] }
 0x4cd   : > { %3268 = vmatprep.subr.bf16.mxu1 %v3481_v10 }
 0x59a   : > { %v1122_v2 = vpop.f32.mrb[2].mxu1 }
 0x59b   : > { %v3082_v3 = vpop.f32.mrb[3].mxu1 }
 0x59e   : > { %v1289_v4 = vpop.f32.mrb[4].mxu1 }
 0x59f   : > { %1294 = vrot.lane.b32.xlu1 %v1289_v4, %s4175_s0  ;;  %v3092_v5 = vpop.f32.mrb[5].mxu1  ;;  %s827_s0 = sand.u32 1, %s3471_s4  }
 0x611   : > { %v1295_v6 = vpop.permute.xlu1 %1294 }
 0x612   : > { %v1297_v7 = vsel %vm961_vm2, %v1122_v2, %v1295_v6 }
 0x613   : > { %3102 = vmatmul.mubr.msk.f32.vlgmr.msra.gmra.mrb[4].mxu0 %vm844_vm0, %v1297_v7 }
 0x614   : > { %3131 = vmatprep.mubr.msk.f32.mxu0 %vm3482_vm1, %v3483_v13  ;;  %3273 = vmatpush3.bf16.msra.mxu0 %v3272_v39 }
 0x615   : > { %3274 = vmatprep.subr.bf16.mxu0 %v3481_v10 }
 0x618   : > { %3276 = vmatpush3.bf16.msra.mxu0 %v3275_v42 }
 0x619   : > { %3277 = vmatprep.subr.bf16.mxu0 %v3481_v10 }
 0x61c   : > { %3279 = vmatpush3.bf16.msra.mxu0 %v3278_v45 }
 0x61d   : > { %3280 = vmatprep.subr.bf16.mxu0 %v3481_v10 }
 0x620   : > { %3282 = vmatpush3.bf16.msra.mxu0 %v3281_v48 }
 0x621   : > { %3155 = vmatprep.subr.mxu0 %v3483_v13 }
 0x6e6   : > { %v1378_v9 = vpop.f32.mrb[4].mxu0 }
 0x6e7   : > { %v1379_v11 = vadd.f32 %v2911_v8, %v1378_v9  ;;  %v3103_v12 = vpop.f32.mrb[5].mxu0  ;;  %v2921_v9 = vld [vmem:[%s4212_s28 + $0x20] sm:$0xff] }
 0x6e9   : > { %v1382_v14 = vadd.f32 %v1379_v11, %v3715_v23  ;;  %v1414_v23 = vld [vmem:[%s4220_s3 + $0x10] sm:$0xff]  ;;  %v2922_v11 = vld [vmem:[%s4212_s28 + $0x28] sm:$0xff] }
 0x6ea   : > { %v3269_v26 = vpack.c.bf16 %v1415_v25, %v1414_v23  ;;  %v3284_v12 = vpack.c.bf16 %v2922_v11, %v2921_v9  ;;  %v2939_v9 = vld [vmem:[%s4219_s29 + $0x1] ss:$0 sm:$0xff] }
 0x6eb   : > { %v1385_v15 = vsel %vm844_vm0, %v1382_v14, 0.0 }
 0x6ec   : > { %1386 = vadd.xlane.f32.xlu1 %v1385_v15  ;;  %3270 = vmatpush3.bf16.msra.mxu1 %v3269_v26  ;;  %v2924_v15 = vld [vmem:[%s4212_s28 + $0x38] sm:$0xff]  ;;  %v2926_v26 = vld [vmem:[%s4215_s10 + $0x1] ss:$0 sm:$0xff]  ;;  %s2788_s10 = scalar_lea.sflag [#allocation3], %s827_s0 }
 0x6ed   : > { %3283 = vmatprep.subr.bf16.mxu1 %v3481_v10 }
 0x779   : > { %v1387_v16 = vpop.xlane.xlu1 %1386 }
 0x77a   : > { %v1388_v17 = vmul.f32 0.03125, %v1387_v16 }
 0x77c   : > { %v1389_v18 = vsub.f32 %v1382_v14, %v1388_v17  ;;  %v2923_v14 = vld [vmem:[%s4212_s28 + $0x30] sm:$0xff] }
 0x77d   : > { %v3287_v16 = vpack.c.bf16 %v2924_v15, %v2923_v14 }
 0x77e   : > { %v1390_v19 = vmul.f32 %v1389_v18, %v1389_v18 }
 0x780   : > { %v1391_v20 = vsel %vm844_vm0, %v1390_v19, 0.0 }
 0x781   : > { %1392 = vadd.xlane.f32.xlu0 %v1391_v20 }
 0x80e   : > { %v1393_v27 = vpop.xlane.xlu0 %1392 }
 0x80f   : > { %v1394_v28 = vmul.f32 0.03125, %v1393_v27 }
 0x811   : > { %v1395_v29 = vadd.f32 1e-06, %v1394_v28 }
 0x813   : > { %3395 = vrsqrt.f32 %v1395_v29 }
 0x81d   : > { %v3396_v30 = vpop.eup %3395 }
 0x81e   : > { %v1397_v33 = vmul.f32 %v3396_v30, %v1389_v18 }
 0x820   : > { %v1404_v35 = vmul.f32 %v2913_v32, %v1397_v33 }
 0x822   : > { %v1411_v36 = vadd.f32 %v2914_v34, %v1404_v35 }
 0x824   : > { %3113 = vmatmul.mubr.msk.f32.vlgmr.msra.gmra.mrb[6].mxu1 %vm844_vm0, %v1411_v36 }
 0x825   : > { %3142 = vmatprep.mubr.msk.f32.mxu1 %vm3482_vm1, %v3483_v13  ;;  %3285 = vmatpush3.bf16.msra.mxu1 %v3284_v12 }
 0x826   : > { %3286 = vmatprep.subr.bf16.mxu1 %v3481_v10 }
 0x829   : > { %3288 = vmatpush3.bf16.msra.mxu1 %v3287_v16 }
 0x82a   : > { %3145 = vmatprep.subr.mxu1 %v3483_v13 }
 0x8f7   : > { %v1492_v50 = vpop.f32.mrb[6].mxu1 }
 0x8f8   : > { %v1493_v51 = vadd.f32 %v2915_v49, %v1492_v50  ;;  %v3114_v52 = vpop.f32.mrb[7].mxu1 }
 0x8fa   : > { %v1497_v53 = vmul.f32 0.044715, %v1493_v51  ;;  %v1496_v59 = vmul.f32 0.5, %v1493_v51 }
 0x8fc   : > { %v1498_v54 = vmul.f32 %v1497_v53, %v1493_v51 }
 0x8fe   : > { %v1499_v55 = vmul.f32 %v1498_v54, %v1493_v51 }
 0x900   : > { %v1500_v56 = vadd.f32 %v1499_v55, %v1493_v51 }
 0x902   : > { %v1501_v57 = vmul.f32 0.7978846, %v1500_v56 }
 0x904   : > { %3397 = vtanh.f32 %v1501_v57 }
 0x90e   : > { %v3398_v58 = vpop.eup %3397 }
 0x90f   : > { %v1503_v60 = vadd.f32 1.0, %v3398_v58 }
 0x911   : > { %v1504_v61 = vmul.f32 %v1503_v60, %v1496_v59 }
 0x913   : > { %3132 = vmatmul.mubr.msk.f32.vlgmr.msra.gmra.mrb[6].mxu0 %vm1520_vm4, %v1504_v61  ;;  %v2934_v61 = vld [vmem:[%s4217_s5 + $0x20] sm:$0xff] }
 0x914   : > { %3157 = vmatprep.mubr.msk.f32.mxu0 %vm3482_vm1, %v3483_v13 }
 0x9e6   : > { %v1590_v63 = vpop.f32.mrb[6].mxu0 }
 0x9e7   : > { %v1591_v0 = vadd.f32 %v2917_v62, %v1590_v63  ;;  %v3133_v1 = vpop.f32.mrb[7].mxu0  ;;  %v2935_v62 = vld [vmem:[%s4217_s5 + $0x28] sm:$0xff]  ;;  %v2936_v63 = vld [vmem:[%s4217_s5 + $0x30] sm:$0xff] }
 0x9e8   : > { %v2937_v1 = vld [vmem:[%s4217_s5 + $0x38] sm:$0xff] }
 0x9e9   : > { %v1594_v2 = vadd.f32 %v1591_v0, %v1411_v36  ;;  %v3290_v0 = vpack.c.bf16 %v2935_v62, %v2934_v61  ;;  %v2961_v62 = vld [vmem:[%s4141_s13 + $0x1] ss:$0 sm:$0xff] }
 0x9eb   : > { %v1597_v3 = vsel %vm844_vm0, %v1594_v2, 0.0 }
 0x9ec   : > { %1598 = vadd.xlane.f32.xlu1 %v1597_v3 }
 0xa79   : > { %v1599_v4 = vpop.xlane.xlu1 %1598 }
 0xa7a   : > { %v1600_v5 = vmul.f32 0.03125, %v1599_v4 }
 0xa7c   : > { %v1601_v6 = vsub.f32 %v1594_v2, %v1600_v5  ;;  %v3293_v2 = vpack.c.bf16 %v2937_v1, %v2936_v63 }
 0xa7e   : > { %v1602_v7 = vmul.f32 %v1601_v6, %v1601_v6 }
 0xa80   : > { %v1603_v8 = vsel %vm844_vm0, %v1602_v7, 0.0 }
 0xa81   : > { %1604 = vadd.xlane.f32.xlu1 %v1603_v8 }
 0xb0e   : > { %v1605_v17 = vpop.xlane.xlu1 %1604 }
 0xb0f   : > { %v1606_v18 = vmul.f32 0.03125, %v1605_v17 }
 0xb11   : > { %v1607_v19 = vadd.f32 1e-06, %v1606_v18 }
 0xb13   : > { %3399 = vrsqrt.f32 %v1607_v19 }
 0xb1d   : > { %v3400_v20 = vpop.eup %3399 }
 0xb1e   : > { %v1609_v22 = vmul.f32 %v3400_v20, %v1601_v6 }
 0xb20   : > { %v1616_v23 = vmul.f32 %v2919_v21, %v1609_v22  ;;  %v2945_v22 = vld [vmem:[%s4220_s3 + $0x20] sm:$0xff] }
 0xb22   : > { %v3866_v25 = vadd.f32 %v2920_v24, %v1616_v23  ;;  %v2946_v24 = vld [vmem:[%s4220_s3 + $0x28] sm:$0xff] }
 0xb23   : > { %v3296_v23 = vpack.c.bf16 %v2946_v24, %v2945_v22  ;;  %v2966_v24 = vld [vmem:[%s4143_s15 + $0x1] ss:$0 sm:$0xff] }
 0xb24   : > { %3143 = vmatmul.mubr.msk.f32.vlgmr.msra.gmra.mrb[8].mxu1 %vm844_vm0, %v3866_v25 }
 0xb25   : > { %3147 = vmatprep.mubr.msk.f32.mxu1 %vm3482_vm1, %v3483_v13 }
 0xbf7   : > { %v1706_v27 = vpop.f32.mrb[8].mxu1 }
 0xbf8   : > { %v1707_v28 = vadd.f32 %v2926_v26, %v1706_v27  ;;  %v3144_v29 = vpop.f32.mrb[9].mxu1  ;;  %v2948_v26 = vld [vmem:[%s4220_s3 + $0x38] sm:$0xff] }
 0xbfa   : > { %1878 = vrot.lane.b32.xlu1 %v1707_v28, %s4225_s8  ;;  %1711 = vrot.lane.b32.xlu0 %v1707_v28, %s4226_s23  ;;  %s4234_s23 = sld [smem:[#allocation26_spill]] }
 0xbfe   : > { %1876 = vrot.lane.b32.xlu1 %v1707_v28, %s4227_s24  ;;  %s2974_s24 = sshll.u32 %s3652_s9, 4  ;;  %s3490_s9 = smov [#allocation2]  }
 0xbff   : > { %s3421_s8 = sshll.u32 %s3490_s9, 4  ;;  %s3422_s8 = int_to_ptr.vmem [resolvable:$false] %s3421_s8 }
 0xc6c   : > { %v1879_v30 = vpop.permute.xlu1 %1878  ;;  %v1712_v32 = vpop.permute.xlu0 %1711 }
 0xc6d   : > { %3146 = vmatpush3.xpose.msk.msra.mxu1 %vm961_vm2, %v1712_v32  ;;  %3156 = vmatpush3.xpose.msk.msra.mxu0 %vm961_vm2, %v1879_v30 }
 0xc6e   : > { %3150 = vmatprep.subr.mxu1 %v3483_v13  ;;  %3289 = vmatprep.subr.bf16.mxu0 %v3481_v10 }
 0xc70   : > { %v1877_v33 = vpop.permute.xlu1 %1876  ;;  %3148 = vmatmul.mubr.msk.f32.vlgmr.msra.gmra.mrb[10].mxu1 %vm961_vm2, %v1707_v28 }
 0xc71   : > { %3158 = vmatmul.mubr.msk.f32.vlgmr.msra.gmra.mrb[8].mxu0 %vm961_vm2, %v1877_v33  ;;  %3152 = vmatprep.mubr.msk.f32.mxu1 %vm3482_vm1, %v3483_v13  ;;  %v2943_v33 = vld [vmem:[%s4222_s1 + $0x1] ss:$0 sm:$0xff]  ;;  %s828_s1 = scalar_lea.vmem [#allocation2], %s827_s0 }
 0xc72   : > { %3173 = vmatprep.mubr.msk.f32.mxu0 %vm3482_vm1, %v3483_v13  ;;  %3291 = vmatpush3.bf16.msra.mxu0 %v3290_v0 }
 0xc73   : > { %3292 = vmatprep.subr.bf16.mxu0 %v3481_v10 }
 0xc76   : > { %3294 = vmatpush3.bf16.msra.mxu0 %v3293_v2 }
 0xc77   : > { %3301 = vmatprep.subr.bf16.mxu0 %v3481_v10 }
 0xd43   : > { %v1783_v34 = vpop.f32.mrb[10].mxu1 }
 0xd44   : > { %v1787_v35 = vmul.f32 0.25, %v1783_v34  ;;  %v3149_v36 = vpop.f32.mrb[11].mxu1  ;;  %v1950_v37 = vpop.f32.mrb[8].mxu0 }
 0xd45   : > { %v1954_v38 = vmul.f32 0.25, %v1950_v37  ;;  %v3159_v39 = vpop.f32.mrb[9].mxu0 }
 0xd46   : > { %v1788_v40 = vadd.f32 %v1787_v35, %v3741_v31  ;;  %v2944_v35 = vld [vmem:[%s4223_s25 + $0x1] ss:$0 sm:$0xff]  ;;  %v2953_v39 = vld [vmem:[%s4140_s12 + $0x48] sm:$0xff] }
 0xd47   : > { %v1955_v41 = vadd.f32 %v1954_v38, %v3741_v31  ;;  %v2952_v38 = vld [vmem:[%s4140_s12 + $0x40] sm:$0xff] }
 0xd48   : > { %v1789_v42 = vsel %vm1038_vm3, %v1788_v40, -inf }
 0xd49   : > { %1790 = vmax.xlane.f32.xlu0 %v1789_v42  ;;  %v1956_v43 = vsel %vm1038_vm3, %v1955_v41, -inf  ;;  %v2955_v42 = vld [vmem:[%s4140_s12 + $0x58] sm:$0xff] }
 0xd4a   : > { %1957 = vmax.xlane.f32.xlu1 %v1956_v43 }
 0xd5b   : > { %1800 = vrot.lane.b32.xlu1 %v1707_v28, %s4228_s6 }
 0xdd6   : > { %v1791_v44 = vpop.xlane.xlu0 %1790 }
 0xdd7   : > { %v1792_v45 = vsub.f32 %v1788_v40, %v1791_v44  ;;  %v1958_v46 = vpop.xlane.xlu1 %1957  ;;  %v3302_v40 = vpack.c.bf16 %v2953_v39, %v2952_v38  ;;  %v2956_v44 = vld [vmem:[%s4140_s12 + $0x60] sm:$0xff]  ;;  %v2553_v38 = vld [vmem:[%s4144_s16 + $0x10] sm:$0xff]  ;;  %v2554_v39 = vld [vmem:[%s4144_s16 + $0x18] sm:$0xff] }
 0xdd8   : > { %v1959_v47 = vsub.f32 %v1955_v41, %v1958_v46  ;;  %v2954_v41 = vld [vmem:[%s4140_s12 + $0x50] sm:$0xff] }
 0xdd9   : > { %v1793_v48 = vmul.f32 1.442695, %v1792_v45  ;;  %v3305_v43 = vpack.c.bf16 %v2955_v42, %v2954_v41  ;;  %v2957_v45 = vld [vmem:[%s4140_s12 + $0x68] sm:$0xff]  ;;  %v2627_v41 = vld [vmem:[%s4150_s22] sm:$0xff] }
 0xdda   : > { %v1960_v49 = vmul.f32 1.442695, %v1959_v47  ;;  %v3308_v46 = vpack.c.bf16 %v2957_v45, %v2956_v44  ;;  %v2958_v47 = vld [vmem:[%s4140_s12 + $0x70] sm:$0xff]  ;;  %v2628_v42 = vld [vmem:[%s4150_s22 + $0x8] sm:$0xff]  ;;  %v2630_v45 = vld [vmem:[%s4150_s22 + $0x18] sm:$0xff] }
 0xddb   : > { %3401 = vpow2.f32 %v1793_v48  ;;  %v1801_v50 = vpop.permute.xlu1 %1800  ;;  %v2959_v48 = vld [vmem:[%s4140_s12 + $0x78] sm:$0xff]  ;;  %v3329_v44 = vpack.c.bf16 %v2628_v42, %v2627_v41 }
 0xddc   : > { %3151 = vmatpush3.msra.mxu1 %v1801_v50  ;;  %3403 = vpow2.f32 %v1960_v49  ;;  %v3311_v49 = vpack.c.bf16 %v2959_v48, %v2958_v47  ;;  %v2950_v50 = vld [vmem:[%s4224_s27 + $0x1] ss:$0 sm:$0xff] }
 0xddd   : > { %3160 = vmatprep.subr.mxu1 %v3483_v13 }
 0xde5   : > { %v3402_v31 = vpop.eup %3401 }
 0xde6   : > { %v1795_v51 = vsel %vm1038_vm3, %v3402_v31, 0.0  ;;  %v3404_v52 = vpop.eup %3403 }
 0xde7   : > { %1796 = vadd.xlane.f32.xlu0 %v1795_v51  ;;  %v1962_v53 = vsel %vm1038_vm3, %v3404_v52, 0.0 }
 0xdeb   : > { %1963 = vadd.xlane.f32.xlu0 %v1962_v53 }
 0xe01   : > { %1967 = vrot.lane.b32.xlu0 %v1707_v28, %s4229_s11  ;;  %s4232_s11 = sld [smem:[#allocation24_spill]] }
 0xe74   : > { %v1797_v54 = vpop.xlane.xlu0 %1796 }
 0xe75   : > { %3405 = vrcp.f32 %v1797_v54 }
 0xe78   : > { %v1964_v55 = vpop.xlane.xlu0 %1963 }
 0xe79   : > { %3407 = vrcp.f32 %v1964_v55 }
 0xe7c   : > { %v1968_v58 = vpop.permute.xlu0 %1967 }
 0xe7f   : > { %v3406_v56 = vpop.eup %3405 }
 0xe80   : > { %v1799_v57 = vmul.f32 %v3406_v56, %v3402_v31 }
 0xe82   : > { %3153 = vmatmul.mubr.msk.f32.vlgmr.msra.gmra.mrb[12].mxu1 %vm1038_vm3, %v1799_v57 }
 0xe83   : > { %v3408_v59 = vpop.eup %3407  ;;  %3161 = vmatpush3.msra.mxu1 %v1968_v58  ;;  %3162 = vmatprep.mubr.msk.f32.mxu1 %vm3482_vm1, %v3483_v13 }
 0xe84   : > { %v1966_v60 = vmul.f32 %v3408_v59, %v3404_v52  ;;  %3295 = vmatprep.subr.bf16.mxu1 %v3481_v10 }
 0xe86   : > { %3163 = vmatmul.mubr.msk.f32.vlgmr.msra.gmra.mrb[14].mxu1 %vm1038_vm3, %v1966_v60 }
 0xe87   : > { %3184 = vmatprep.mubr.msk.f32.mxu1 %vm3482_vm1, %v3483_v13  ;;  %3297 = vmatpush3.bf16.msra.mxu1 %v3296_v23 }
 0xe88   : > { %3298 = vmatprep.subr.bf16.mxu1 %v3481_v10 }
 0xf55   : > { %v1872_v3 = vpop.f32.mrb[12].mxu1 }
 0xf56   : > { %v3154_v4 = vpop.f32.mrb[13].mxu1 }
 0xf59   : > { %v2039_v5 = vpop.f32.mrb[14].mxu1 }
 0xf5a   : > { %2044 = vrot.lane.b32.xlu1 %v2039_v5, %s4230_s30  ;;  %v3164_v6 = vpop.f32.mrb[15].mxu1  ;;  %s840_s30 = scalar_lea.vmem %s4154_s26, %s3681_s2  ;;  %s4231_s2 = sld [smem:[#allocation25_spill]] }
 0xfcc   : > { %v2045_v7 = vpop.permute.xlu1 %2044 }
 0xfcd   : > { %v2047_v8 = vsel %vm961_vm2, %v1872_v3, %v2045_v7 }
 0xfce   : > { %3174 = vmatmul.mubr.msk.f32.vlgmr.msra.gmra.mrb[10].mxu0 %vm844_vm0, %v2047_v8 }
 0xfcf   : > { %3203 = vmatprep.mubr.msk.f32.mxu0 %vm3482_vm1, %v3483_v13  ;;  %3303 = vmatpush3.bf16.msra.mxu0 %v3302_v40  ;;  %v3326_v40 = vpack.c.bf16 %v2554_v39, %v2553_v38 }
 0xfd0   : > { %3304 = vmatprep.subr.bf16.mxu0 %v3481_v10 }
 0xfd3   : > { %3306 = vmatpush3.bf16.msra.mxu0 %v3305_v43  ;;  %v2629_v43 = vld [vmem:[%s4150_s22 + $0x10] sm:$0xff] }
 0xfd4   : > { %3307 = vmatprep.subr.bf16.mxu0 %v3481_v10 }
 0xfd7   : > { %3309 = vmatpush3.bf16.msra.mxu0 %v3308_v46  ;;  %v3332_v46 = vpack.c.bf16 %v2630_v45, %v2629_v43 }
 0xfd8   : > { %3310 = vmatprep.subr.bf16.mxu0 %v3481_v10 }
 0xfdb   : > { %3312 = vmatpush3.bf16.msra.mxu0 %v3311_v49 }
 0xfdc   : > { %3328 = vmatprep.subr.bf16.mxu0 %v3481_v10 }
0x10a1   : > { %v2130_v11 = vpop.f32.mrb[10].mxu0 }
0x10a2   : > { %v2131_v12 = vadd.f32 %v2939_v9, %v2130_v11  ;;  %v3175_v14 = vpop.f32.mrb[11].mxu0  ;;  %v2383_v9 = vld [vmem:[%s4146_s18] sm:$0xff]  ;;  %v2384_v11 = vld [vmem:[%s4146_s18 + $0x8] sm:$0xff] }
0x10a3   : > { %v2385_v14 = vld [vmem:[%s4146_s18 + $0x10] sm:$0xff] }
0x10a4   : > { %v2134_v15 = vadd.f32 %v2131_v12, %v3866_v25  ;;  %v2947_v25 = vld [vmem:[%s4220_s3 + $0x30] sm:$0xff]  ;;  %v3314_v12 = vpack.c.bf16 %v2384_v11, %v2383_v9 }
0x10a5   : > { %v3299_v27 = vpack.c.bf16 %v2948_v26, %v2947_v25  ;;  %v2468_v26 = vld [vmem:[%s4148_s20] sm:$0xff] }
0x10a6   : > { %v2139_v16 = vsel %vm844_vm0, %v2134_v15, 0.0 }
0x10a7   : > { %2140 = vadd.xlane.f32.xlu1 %v2139_v16  ;;  %3300 = vmatpush3.bf16.msra.mxu1 %v3299_v27  ;;  %v2469_v27 = vld [vmem:[%s4148_s20 + $0x8] sm:$0xff] }
0x10a8   : > { %3313 = vmatprep.subr.bf16.mxu1 %v3481_v10 }
0x1134   : > { %v2141_v17 = vpop.xlane.xlu1 %2140 }
0x1135   : > { %v2142_v18 = vmul.f32 0.03125, %v2141_v17 }
0x1137   : > { %v2143_v19 = vsub.f32 %v2134_v15, %v2142_v18  ;;  %v2386_v15 = vld [vmem:[%s4146_s18 + $0x18] sm:$0xff] }
0x1138   : > { %v3317_v16 = vpack.c.bf16 %v2386_v15, %v2385_v14 }
0x1139   : > { %v2144_v20 = vmul.f32 %v2143_v19, %v2143_v19 }
0x113b   : > { %v2145_v21 = vsel %vm844_vm0, %v2144_v20, 0.0 }
0x113c   : > { %2146 = vadd.xlane.f32.xlu0 %v2145_v21  ;;  %v2965_v21 = vld [vmem:[%s4142_s14 + $0x1] ss:$0 sm:$0xff] }
0x11c9   : > { %v2147_v28 = vpop.xlane.xlu0 %2146 }
0x11ca   : > { %v2148_v29 = vmul.f32 0.03125, %v2147_v28  ;;  %v3320_v28 = vpack.c.bf16 %v2469_v27, %v2468_v26 }
0x11cc   : > { %v2149_v30 = vadd.f32 1e-06, %v2148_v29  ;;  %v2967_v29 = vld [vmem:[%s4147_s19] ss:$0 sm:$0xff] }
0x11ce   : > { %3409 = vrsqrt.f32 %v2149_v30  ;;  %v2551_v30 = vld [vmem:[%s4144_s16] sm:$0xff] }
0x11d8   : > { %v3410_v32 = vpop.eup %3409 }
0x11d9   : > { %v2151_v34 = vmul.f32 %v3410_v32, %v2143_v19  ;;  %v2552_v32 = vld [vmem:[%s4144_s16 + $0x8] sm:$0xff] }
0x11db   : > { %v2158_v36 = vmul.f32 %v2943_v33, %v2151_v34 }
0x11dd   : > { %v2165_v37 = vadd.f32 %v2944_v35, %v2158_v36  ;;  %v3323_v36 = vpack.c.bf16 %v2552_v32, %v2551_v30 }
0x11df   : > { %3185 = vmatmul.mubr.msk.f32.vlgmr.msra.gmra.mrb[16].mxu1 %vm844_vm0, %v2165_v37 }
0x11e0   : > { %3214 = vmatprep.mubr.msk.f32.mxu1 %vm3482_vm1, %v3483_v13  ;;  %3315 = vmatpush3.bf16.msra.mxu1 %v3314_v12 }
0x11e1   : > { %3316 = vmatprep.subr.bf16.mxu1 %v3481_v10 }
0x11e4   : > { %3318 = vmatpush3.bf16.msra.mxu1 %v3317_v16 }
0x11e5   : > { %3319 = vmatprep.subr.bf16.mxu1 %v3481_v10 }
0x12b2   : > { %v2248_v31 = vpop.f32.mrb[16].mxu1 }
0x12b3   : > { %v2249_v51 = vadd.f32 %v2950_v50, %v2248_v31  ;;  %v3186_v52 = vpop.f32.mrb[17].mxu1  ;;  %v2555_v50 = vld [vmem:[%s4145_s17] sm:$0x1] }
0x12b5   : > { %v2253_v53 = vmul.f32 0.044715, %v2249_v51  ;;  %v2252_v59 = vmul.f32 0.5, %v2249_v51 }
0x12b7   : > { %v2254_v54 = vmul.f32 %v2253_v53, %v2249_v51  ;;  %v2706_v53 = vld [vmem:[%s4231_s2] sm:$0xff] }
0x12b9   : > { %v2255_v55 = vmul.f32 %v2254_v54, %v2249_v51  ;;  %v2707_v54 = vld [vmem:[%s4231_s2 + $0x8] sm:$0xff]  ;;  %s2803_s2 = sshll.u32 %s828_s1, 4  ;;  %s4088_s2 = int_to_ptr.vmem [resolvable:$true] %s2803_s2 }
0x12ba   : > { %s3417_s7 = scalar_lea.vmem %s4088_s2, 16  ;;  %p3424_p0 = scmp.lt.s32.totalorder %s4088_s2, %s3422_s8 }
0x12bb   : > { %v2256_v56 = vadd.f32 %v2255_v55, %v2249_v51  ;;  %v3335_v55 = vpack.c.bf16 %v2707_v54, %v2706_v53  ;;  %p3418_p11 = scmp.ne.s32.totalorder %s4088_s2, %s3417_s7 }
0x12bd   : > { %v2257_v57 = vmul.f32 0.7978846, %v2256_v56  ;;  %v2631_v56 = vld [vmem:[%s4232_s11] sm:$0x1]  ;;  %s4235_s11 = sld [smem:[#allocation27_spill]]  ;;  %p3419_p12 = pnand %p3418_p11, %p3669_p5 }
0x12bf   : > { %3411 = vtanh.f32 %v2257_v57  ;;  %p3420_p13 = pneg %p3419_p12 }
0x12c3   : > { %s4086_s5 = scalar_lea.hbm %s4235_s11, %s2974_s24 }
0x12c9   : > { %v3412_v58 = vpop.eup %3411 }
0x12ca   : > { %v2259_v60 = vadd.f32 1.0, %v3412_v58 }
0x12cc   : > { %v2260_v61 = vmul.f32 %v2259_v60, %v2252_v59 }
0x12ce   : > { %3204 = vmatmul.mubr.msk.f32.vlgmr.msra.gmra.mrb[12].mxu0 %vm1520_vm4, %v2260_v61  ;;  %v2708_v61 = vld [vmem:[%s4234_s23] sm:$0x1]  ;;  %s3423_s23 = scalar_lea.vmem %s3422_s8, 32 }
0x12cf   : > { %3243 = vmatprep.mubr.msk.f32.mxu0 %vm3482_vm1, %v3483_v13  ;;  %3330 = vmatpush3.bf16.msra.mxu0 %v3329_v44  ;;  %p3425_p1 = scmp.lt.s32.totalorder %s3423_s23, %s3417_s7 }
0x12d0   : > { %3331 = vmatprep.subr.bf16.mxu0 %v3481_v10 }
0x12d1   : > { %p3426_p2 = por %p3425_p1, %p3424_p0 }
0x12d3   : > { %3333 = vmatpush3.bf16.msra.mxu0 %v3332_v46  ;;  %p3427_p3 = pnand %p3426_p2, %p3420_p13 }
0x13a1   : > { %v2347_v63 = vpop.f32.mrb[12].mxu0 }
0x13a2   : > { %v2348_v0 = vadd.f32 %v2961_v62, %v2347_v63  ;;  %v3205_v1 = vpop.f32.mrb[13].mxu0 }
0x13a4   : > { %v2351_v2 = vadd.f32 %v2348_v0, %v2165_v37 }
0x13a6   : > { %v2356_v3 = vsel %vm844_vm0, %v2351_v2, 0.0 }
0x13a7   : > { %2357 = vadd.xlane.f32.xlu0 %v2356_v3 }
0x1434   : > { %v2358_v4 = vpop.xlane.xlu0 %2357 }
0x1435   : > { %v2359_v5 = vmul.f32 0.03125, %v2358_v4 }
0x1437   : > { %v2360_v6 = vsub.f32 %v2351_v2, %v2359_v5 }
0x1439   : > { %v2361_v7 = vmul.f32 %v2360_v6, %v2360_v6 }
0x143b   : > { %v2362_v8 = vsel %vm844_vm0, %v2361_v7, 0.0 }
0x143c   : > { %2363 = vadd.xlane.f32.xlu1 %v2362_v8 }
0x14c9   : > { %v2364_v17 = vpop.xlane.xlu1 %2363 }
0x14ca   : > { %v2365_v18 = vmul.f32 0.03125, %v2364_v17 }
0x14cc   : > { %v2366_v19 = vadd.f32 1e-06, %v2365_v18 }
0x14ce   : > { %3413 = vrsqrt.f32 %v2366_v19 }
0x14d8   : > { %v3414_v20 = vpop.eup %3413 }
0x14d9   : > { %v2368_v22 = vmul.f32 %v3414_v20, %v2360_v6 }
0x14db   : > { %v2375_v23 = vmul.f32 %v2965_v21, %v2368_v22 }
0x14dd   : > { %v2382_v25 = vadd.f32 %v2966_v24, %v2375_v23 }
0x14df   : > { %3215 = vmatmul.mubr.msk.f32.vlgmr.msra.gmra.mrb[18].mxu1 %vm844_vm0, %v2382_v25 }
0x14e0   : > { %3221 = vmatprep.mubr.msk.f32.mxu1 %vm3482_vm1, %v3483_v13  ;;  %3321 = vmatpush3.bf16.msra.mxu1 %v3320_v28 }
0x14e1   : > { %3322 = vmatprep.subr.bf16.mxu1 %v3481_v10 }
0x15b2   : > { %v2463_v33 = vpop.f32.mrb[18].mxu1 }
0x15b3   : > { %v2464_v34 = vadd.f32 %v2967_v29, %v2463_v33  ;;  %v3216_v35 = vpop.f32.mrb[19].mxu1 }
0x15b5   : > { %v2467_v37 = vmax.f32 %v2464_v34, 0.0 }
0x15b7   : > { %3222 = vmatmul.mubr.msk.f32.vlgmr.msra.gmra.mrb[20].mxu1 %vm961_vm2, %v2467_v37 }
0x15b8   : > { %3324 = vmatpush3.bf16.msra.mxu1 %v3323_v36  ;;  %3232 = vmatprep.mubr.msk.f32.mxu1 %vm3482_vm1, %v3483_v13 }
0x15b9   : > { %3325 = vmatprep.subr.bf16.mxu1 %v3481_v10 }
0x15bc   : > { %3327 = vmatpush3.bf16.msra.mxu1 %v3326_v40 }
0x15bd   : > { %3334 = vmatprep.subr.bf16.mxu1 %v3481_v10 }
0x15bf   : > { %3233 = vmatmul.mubr.msk.f32.vlgmr.msra.gmra.mrb[22].mxu1 %vm844_vm0, %v2382_v25 }
0x15c0   : > { %3250 = vmatprep.mubr.msk.f32.mxu1 %vm3482_vm1, %v3483_v13  ;;  %v2969_v13 = vld [vmem:[%s4149_s21] ss:$0 sm:$0xff]  ;;  %3336 = vmatpush3.bf16.msra.mxu1 %v3335_v55 }
0x168a   : > { %v2546_v47 = vpop.f32.mrb[20].mxu1 }
0x168b   : > { %v2547_v48 = vadd.f32 %v2969_v13, %v2546_v47  ;;  %v3223_v49 = vpop.f32.mrb[21].mxu1 }
0x168d   : > { %2550 = vst [vmem:[%s840_s30] sm:$0xff] %v2547_v48 }
0x1692   : > { %v2622_v31 = vpop.f32.mrb[22].mxu1 }
0x1693   : > { %v2623_v10 = vadd.f32 %v2622_v31, %v2555_v50  ;;  %v3234_v51 = vpop.f32.mrb[23].mxu1 }
0x1695   : > { %3415 = vtanh.f32 %v2623_v10 }
0x169f   : > { %v3416_v52 = vpop.eup %3415 }
0x16a0   : > { %3244 = vmatmul.mubr.msk.f32.vlgmr.msra.gmra.mrb[14].mxu0 %vm844_vm0, %v3416_v52 }
0x1773   : > { %v2701_v57 = vpop.f32.mrb[14].mxu0 }
0x1774   : > { %v2702_v58 = vadd.f32 %v2701_v57, %v2631_v56  ;;  %v3245_v59 = vpop.f32.mrb[15].mxu0 }
0x1776   : > { %v2705_v60 = vmax.f32 %v2702_v58, 0.0 }
0x1778   : > { %3251 = vmatmul.mubr.msk.f32.vlgmr.msra.gmra.mrb[24].mxu1 %vm961_vm2, %v2705_v60 }
0x184b   : > { %v2778_v62 = vpop.f32.mrb[24].mxu1 }
0x184c   : > { %v2779_v63 = vadd.f32 %v2778_v62, %v2708_v61  ;;  %v3252_v0 = vpop.f32.mrb[25].mxu1 }
0x184e   : > { %2782 = vst [vmem:[%s828_s1] sm:$0x1] %v2779_v63 }
0x184f   : > { %3430 = shalt.err (!%p3427_p3)
}
0x1850   : > { %s3431_s0 = scalar_lea.hbm %s4086_s5, 16  ;;  %s3435_s6 = scalar_lea.hbm %s4235_s11, 32 }
0x1851   : > { %p3432_p4 = scmp.ne.s32.totalorder %s4086_s5, %s3431_s0  ;;  %p3436_p9 = scmp.lt.u32.totalorder %s4086_s5, %s4235_s11 }
0x1852   : > { %p3437_p10 = scmp.lt.u32.totalorder %s3435_s6, %s3431_s0  ;;  %p3439_p12 = scmp.lt.u32.totalorder %s3431_s0, %s4086_s5 }
0x1853   : > { %p3433_p7 = pnand %p3432_p4, %p3669_p5 }
0x1854   : > { %p3438_p11 = por %p3437_p10, %p3436_p9 }
0x1855   : > { %p3434_p8 = pneg %p3433_p7 }
0x1856   : > { %p3440_p13 = por %p3439_p12, %p3438_p11 }
0x1858   : > { %p3441_p0 = pnand %p3440_p13, %p3434_p8 }
0x185a   : > { %3444 = shalt.err (!%p3441_p0)
}
0x185b   : > { %3337 = dma.vmem_to_hbm [thread:$0]  (%p3669_p5), %s4088_s2, 16, %s4086_s5, %s2788_s10  }
0x185c PF: > { %s4236_s7 = sld [smem:[#allocation7_spill]]  ;;  %s4237_s8 = sld [smem:[#allocation5_spill]] }
0x1862   : > { %p3343_p1 = scmp.ge.s32.totalorder %s4236_s7, 2  ;;  %s2822_s24 = sand.u32 1, %s4237_s8  }
0x1863   : > { %s2823_s1 = scalar_lea.sflag [#allocation3], %s2822_s24 }
0x1864   : > { %p3340_p2 = pnand %p3343_p1, %p3673_p6 }
0x1866   : > { %3462 = dma.done.wait (!%p3340_p2), %s2823_s1, 16  }
0x1867   : > { %3464 = vsyncadd (!%p3340_p2), %s2823_s1, 4294967280  ;;  %s4239_s30 = sld [smem:[#allocation8_spill]]  ;;  %s4240_s0 = sld [smem:[#allocation6_spill]] }
0x1868   : > { %s4241_s8 = sld [smem:[#allocation9_spill]]  ;;  %s4242_s7 = smov %s3471_s4 }
0x186d   : > { %p38_p3 = scmp.ge.s32.totalorder %s4239_s30, 4   ;;  %s4243_s4 = smov %s4240_s0 }
0x186f   :  { %40 = sbr.rel (!%p38_p3) target bundleno = 20 (0x14), region = 186 }
0x1876   :  { %2827 = vsyncpa [#allocation3], 1 }
0x1877   :  { %2829 = vsyncpa [#allocation3 + $0x1], 1 }

</bundles_post_ra>
